<compile_context>
chip_gen: v5e
topology: v5e:2x2
jax: 0.10.0
libtpu: 0.0.40
codegen_flags: <defaults>
</compile_context>

<pallas_src>
import math
from functools import partial

import jax
import jax.numpy as jnp
from jax.experimental import pallas as pl
from jax.experimental.pallas import tpu as pltpu


def _round_up(x, m):
    return (x + m - 1) // m * m


def gru_d_kernel(gx_ref, seq_ref, par_ref, out_ref, gi_scr, dh_scr, *,
                 hidden_size, step_size, row_cell, row_gh, row_fc):
    H = hidden_size
    H3 = 3 * H
    T = step_size
    B = out_ref.shape[0]
    O = out_ref.shape[1]

    # ---- unpack sequence channels (one-time, off the recurrence chain) ------
    xs = seq_ref[0]                                   # (T, B)
    xs = jnp.where(jnp.isnan(xs), -1.0, xs)           # mirrors `xs[xs != xs] = -1`
    x_last = seq_ref[1]
    masks = seq_ref[2]
    d_fwd = seq_ref[3]
    x_next = seq_ref[4]

    gxw = gx_ref[0]          # gamma_x_l weight (scalar; input_size == 1)
    gxb = gx_ref[1]          # gamma_x_l bias

    # ---- unpack consolidated parameter slab (one-time static slices) --------
    whh = par_ref[0:H, 0:H3]                 # (H, 3H) GRUCell weight_hh^T
    wih_x = par_ref[row_cell + 0, 0:H3]      # (3H,)  weight_ih^T, x_im column
    wih_m = par_ref[row_cell + 1, 0:H3]      # (3H,)  weight_ih^T, mask column
    bih = par_ref[row_cell + 2, 0:H3]        # (3H,)
    bhh = par_ref[row_cell + 3, 0:H3]        # (3H,)
    ghw = par_ref[row_gh + 0, 0:H]           # (H,)   gamma_h_l weight^T
    ghb = par_ref[row_gh + 1, 0:H]           # (H,)   gamma_h_l bias
    fcw = par_ref[row_fc:row_fc + H, 0:O]    # (H, O)
    fcb = par_ref[row_fc + H, 0:O]           # (O,)

    # ---- hoisted precompute: all h-independent work over all T steps --------
    # delta_x = exp(-relu(gamma_x_l(d)))                                 (T, B)
    delta_x = jnp.exp(-jnp.maximum(d_fwd * gxw + gxb, 0.0))
    # imputation                                                         (T, B)
    x_im = masks * xs + (1.0 - masks) * (delta_x * x_last + (1.0 - delta_x) * x_next)
    # delta_h = exp(-relu(gamma_h_l(d))) staged in VMEM scratch      (T, B, H)
    dh_scr[...] = jnp.exp(-jnp.maximum(d_fwd[:, :, None] * ghw + ghb, 0.0))

    # Packed input-side GRU pre-activations, (T, B, 3H), staged in VMEM.
    # Fold bih (all gates) + bhh for r/z; bhh_n must stay inside the
    # r-multiplied term (PyTorch GRUCell semantics) so it is kept separate.
    lane = jax.lax.broadcasted_iota(jnp.int32, (1, H3), 1)
    bias = bih + jnp.where(lane < 2 * H, bhh, 0.0)           # (1, 3H)
    gi_scr[...] = (x_im[:, :, None] * wih_x
                   + masks[:, :, None] * wih_m + bias)
    bhh_n = jnp.broadcast_to(bhh[2 * H:H3], (B, H))          # hoisted broadcast

    # Loop-invariant bf16 RHS for the fused per-step MXU dot (f32 accumulate).
    whh_bf = whh.astype(jnp.bfloat16)

    # ---- serial recurrence: fully unrolled, minimal dependency chain --------
    h = jnp.zeros((B, H), dtype=jnp.float32)
    for t in range(T):                      # static T -> fully unrolled trace
        h = dh_scr[t] * h
        # single fused (B,H)@(H,3H) MXU dot per step, bf16 in / f32 out
        gh = jnp.dot(h.astype(jnp.bfloat16), whh_bf,
                     preferred_element_type=jnp.float32)     # (B, 3H)
        gi_t = gi_scr[t]                                     # (B, 3H)
        # r and z through one EUP sigmoid over a packed (B, 2H) slab
        rz = jax.nn.sigmoid(gi_t[:, 0:2 * H] + gh[:, 0:2 * H])
        r = rz[:, 0:H]
        z = rz[:, H:2 * H]
        n = jnp.tanh(gi_t[:, 2 * H:H3] + r * (gh[:, 2 * H:H3] + bhh_n))
        h = (1.0 - z) * n + z * h

    # ---- final fc (single small matmul, kept f32) ----------------------------
    out_ref[...] = (jnp.dot(h, fcw, preferred_element_type=jnp.float32)
                    + fcb).astype(out_ref.dtype)


def gru_d_forward(inp, params, hidden_size, output_size):
    """inp: (B, 5, T, 1) f32; channels = [xs, x_last_obs, masks, d_forwards, x_next_obs]."""
    B, C, T, F = inp.shape
    assert C == 5 and F == 1, "kernel assumes input_size == 1 (GRUCell input = [x_im, mask])"
    H = hidden_size
    O = output_size
    H3 = 3 * H

    # Sequences packed channel/time-major: (5, T, B)  -> one VMEM DMA.
    seqs = jnp.transpose(inp[..., 0], (1, 2, 0))

    # gamma_x_l scalars -> SMEM.
    gx = jnp.concatenate([params["gxw"].reshape(-1),
                          params["gxb"].reshape(-1)])                   # (2,)

    # All remaining small parameters consolidated into one padded VMEM slab.
    row_cell = _round_up(H, 8)          # whh occupies rows [0, H)
    row_gh = row_cell + 8               # wih_x / wih_m / bih / bhh rows
    row_fc = row_gh + 8                 # gamma_h weight/bias rows
    n_rows = row_fc + _round_up(H + 1, 8)
    n_lanes = _round_up(max(H3, 128), 128)

    P = jnp.zeros((n_rows, n_lanes), jnp.float32)
    P = P.at[0:H, 0:H3].set(params["whh"])
    P = P.at[row_cell + 0, 0:H3].set(params["wih"][0])
    P = P.at[row_cell + 1, 0:H3].set(params["wih"][1])
    P = P.at[row_cell + 2, 0:H3].set(params["bih"][0])
    P = P.at[row_cell + 3, 0:H3].set(params["bhh"][0])
    P = P.at[row_gh + 0, 0:H].set(params["ghw"][0])
    P = P.at[row_gh + 1, 0:H].set(params["ghb"][0])
    P = P.at[row_fc:row_fc + H, 0:O].set(params["fcw"])
    P = P.at[row_fc + H, 0:O].set(params["fcb"][0])

    vmem = pl.BlockSpec(memory_space=pltpu.MemorySpace.VMEM)
    smem = pl.BlockSpec(memory_space=pltpu.MemorySpace.SMEM)
    kernel = partial(gru_d_kernel, hidden_size=H, step_size=T,
                     row_cell=row_cell, row_gh=row_gh, row_fc=row_fc)

    return pl.pallas_call(
        kernel,
        out_shape=jax.ShapeDtypeStruct((B, O), jnp.float32),
        in_specs=[smem, vmem, vmem],
        out_specs=vmem,
        scratch_shapes=[pltpu.VMEM((T, B, H3), jnp.float32),   # packed gi
                        pltpu.VMEM((T, B, H), jnp.float32)],   # delta_h
    )(gx, seqs, P)


def gru_d_reference(inp, params, hidden_size):
    """Plain-JAX f32 mirror of the PyTorch forward (output_last=True, x_flag=False)."""
    B, _, T, _ = inp.shape
    H = hidden_size
    xs = inp[:, 0, :, 0]
    xs = jnp.where(jnp.isnan(xs), -1.0, xs)
    x_last = inp[:, 1, :, 0]
    masks = inp[:, 2, :, 0]
    d_fwd = inp[:, 3, :, 0]
    x_next = inp[:, 4, :, 0]

    h = jnp.zeros((B, H), jnp.float32)
    for t in range(T):
        x = xs[:, t:t + 1]
        xl = x_last[:, t:t + 1]
        xn = x_next[:, t:t + 1]
        m = masks[:, t:t + 1]
        d = d_fwd[:, t:t + 1]

        delta_x = jnp.exp(-jnp.maximum(0.0, d @ params["gxw"] + params["gxb"]))
        delta_h = jnp.exp(-jnp.maximum(0.0, d @ params["ghw"] + params["ghb"]))
        x_im = m * x + (1.0 - m) * (delta_x * xl + (1.0 - delta_x) * xn)
        inputs = jnp.concatenate([x_im, m], axis=1)
        h = delta_h * h
        gi = inputs @ params["wih"] + params["bih"]
        gh = h @ params["whh"] + params["bhh"]
        r = jax.nn.sigmoid(gi[:, :H] + gh[:, :H])
        z = jax.nn.sigmoid(gi[:, H:2 * H] + gh[:, H:2 * H])
        n = jnp.tanh(gi[:, 2 * H:] + r * gh[:, 2 * H:])
        h = (1.0 - z) * n + z * h
    return h @ params["fcw"] + params["fcb"]


def init_params(key, input_size, hidden_size, output_size):
    # Deterministic synthetic parameters matching nn.Linear / nn.GRUCell shapes
    # (stored pre-transposed as (in, out)).
    ks = jax.random.split(key, 10)

    def u(k, shape, scale):
        return jax.random.uniform(k, shape, jnp.float32, -scale, scale)

    s_in = 1.0 / math.sqrt(input_size)
    s_h = 1.0 / math.sqrt(hidden_size)
    return {
        "gxw": u(ks[0], (input_size, input_size), s_in),          # gamma_x_l: Linear(1, 1)
        "gxb": u(ks[1], (1, input_size), s_in),
        "ghw": u(ks[2], (input_size, hidden_size), s_in),         # gamma_h_l: Linear(1, H)
        "ghb": u(ks[3], (1, hidden_size), s_in),
        "wih": u(ks[4], (2 * input_size, 3 * hidden_size), s_h),  # GRUCell(2, H) weight_ih^T
        "bih": u(ks[5], (1, 3 * hidden_size), s_h),
        "whh": u(ks[6], (hidden_size, 3 * hidden_size), s_h),     # GRUCell weight_hh^T
        "bhh": u(ks[7], (1, 3 * hidden_size), s_h),
        "fcw": u(ks[8], (hidden_size, output_size), s_h),         # fc: Linear(H, O)
        "fcb": u(ks[9], (1, output_size), s_h),
    }


if __name__ == "__main__":
    B, T = 8, 8               # batch, step_size
    INPUT_SIZE = 1            # per-step feature size implied by forward's [:, i:i+1] slicing
    HIDDEN = 32
    OUTPUT = 4

    key = jax.random.PRNGKey(0)
    k_par, k_inp, k_mask = jax.random.split(key, 3)

    params = init_params(k_par, INPUT_SIZE, HIDDEN, OUTPUT)

    # input: (B, 5, T, 1); channel 0=xs, 1=x_last_obs, 2=masks, 3=d_forwards, 4=x_next_obs
    inp = jax.random.normal(k_inp, (B, 5, T, 1), dtype=jnp.float32)
    masks = (jax.random.uniform(k_mask, (B, T, 1)) > 0.5).astype(jnp.float32)
    inp = inp.at[:, 2, :, :].set(masks)                       # binary mask channel
    inp = inp.at[:, 3, :, :].set(jnp.abs(inp[:, 3, :, :]))    # non-negative deltas
    # inject NaNs into xs channel to exercise `xs[xs != xs] = -1`
    inp = inp.at[0, 0, 2, 0].set(jnp.nan)
    inp = inp.at[1, 0, 5, 0].set(jnp.nan)

    out = gru_d_forward(inp, params, HIDDEN, OUTPUT)
    out = jax.block_until_ready(out)

    ref = jax.block_until_ready(gru_d_reference(inp, params, HIDDEN))
    assert out.shape == (B, OUTPUT)
    assert jnp.all(jnp.isfinite(out))
    # Recurrence matmuls run with bf16 MXU inputs (f32 accumulation); tolerance
    # vs the pure-f32 reference is widened accordingly.
    assert jnp.allclose(out, ref, rtol=1e-2, atol=1e-2), (out, ref)

    print("KERNEL_OK")
</pallas_src>

<mosaic_0001>
module attributes {stable_mosaic.version = 11 : i64} {
  func.func @gru_d_kernel(%arg0: memref<2xf32, #tpu.memory_space<smem>>, %arg1: memref<5x8x8xf32, #tpu.memory_space<vmem>>, %arg2: memref<88x128xf32, #tpu.memory_space<vmem>>, %arg3: memref<8x4xf32, #tpu.memory_space<vmem>>, %arg4: memref<8x8x96xf32, #tpu.memory_space<vmem>>, %arg5: memref<8x8x32xf32, #tpu.memory_space<vmem>>) attributes {dimension_semantics = [], scalar_prefetch = 0 : i64, scratch_operands = 2 : i64, tpu.core_type = #tpu.core_type<tc>} {
    %c0 = arith.constant 0 : index
    %c0_0 = arith.constant 0 : index
    %c0_1 = arith.constant 0 : index
    %0 = vector.load %arg1[%c0, %c0_0, %c0_1] : memref<5x8x8xf32, #tpu.memory_space<vmem>>, vector<1x8x8xf32>
    %1 = vector.shape_cast %0 : vector<1x8x8xf32> to vector<8x8xf32>
    %2 = arith.cmpf one, %1, %1 : vector<8x8xf32>
    %cst = arith.constant -1.000000e+00 : f32
    %3 = vector.broadcast %cst : f32 to vector<8x8xf32>
    %4 = arith.select %2, %3, %1 : vector<8x8xi1>, vector<8x8xf32>
    %c1 = arith.constant 1 : index
    %c0_2 = arith.constant 0 : index
    %c0_3 = arith.constant 0 : index
    %5 = vector.load %arg1[%c1, %c0_2, %c0_3] : memref<5x8x8xf32, #tpu.memory_space<vmem>>, vector<1x8x8xf32>
    %6 = vector.shape_cast %5 : vector<1x8x8xf32> to vector<8x8xf32>
    %c2 = arith.constant 2 : index
    %c0_4 = arith.constant 0 : index
    %c0_5 = arith.constant 0 : index
    %7 = vector.load %arg1[%c2, %c0_4, %c0_5] : memref<5x8x8xf32, #tpu.memory_space<vmem>>, vector<1x8x8xf32>
    %8 = vector.shape_cast %7 : vector<1x8x8xf32> to vector<8x8xf32>
    %c3 = arith.constant 3 : index
    %c0_6 = arith.constant 0 : index
    %c0_7 = arith.constant 0 : index
    %9 = vector.load %arg1[%c3, %c0_6, %c0_7] : memref<5x8x8xf32, #tpu.memory_space<vmem>>, vector<1x8x8xf32>
    %10 = vector.shape_cast %9 : vector<1x8x8xf32> to vector<8x8xf32>
    %c4 = arith.constant 4 : index
    %c0_8 = arith.constant 0 : index
    %c0_9 = arith.constant 0 : index
    %11 = vector.load %arg1[%c4, %c0_8, %c0_9] : memref<5x8x8xf32, #tpu.memory_space<vmem>>, vector<1x8x8xf32>
    %12 = vector.shape_cast %11 : vector<1x8x8xf32> to vector<8x8xf32>
    %c0_10 = arith.constant 0 : index
    %13 = memref.load %arg0[%c0_10] : memref<2xf32, #tpu.memory_space<smem>>
    %c1_11 = arith.constant 1 : index
    %14 = memref.load %arg0[%c1_11] : memref<2xf32, #tpu.memory_space<smem>>
    %c0_12 = arith.constant 0 : index
    %c0_13 = arith.constant 0 : index
    %15 = vector.load %arg2[%c0_12, %c0_13] : memref<88x128xf32, #tpu.memory_space<vmem>>, vector<32x96xf32>
    %c32 = arith.constant 32 : index
    %c0_14 = arith.constant 0 : index
    %16 = vector.load %arg2[%c32, %c0_14] : memref<88x128xf32, #tpu.memory_space<vmem>>, vector<1x96xf32>
    %17 = vector.shape_cast %16 : vector<1x96xf32> to vector<96xf32>
    %c33 = arith.constant 33 : index
    %c0_15 = arith.constant 0 : index
    %18 = vector.load %arg2[%c33, %c0_15] : memref<88x128xf32, #tpu.memory_space<vmem>>, vector<1x96xf32>
    %19 = vector.shape_cast %18 : vector<1x96xf32> to vector<96xf32>
    %c34 = arith.constant 34 : index
    %c0_16 = arith.constant 0 : index
    %20 = vector.load %arg2[%c34, %c0_16] : memref<88x128xf32, #tpu.memory_space<vmem>>, vector<1x96xf32>
    %21 = vector.shape_cast %20 : vector<1x96xf32> to vector<96xf32>
    %c35 = arith.constant 35 : index
    %c0_17 = arith.constant 0 : index
    %22 = vector.load %arg2[%c35, %c0_17] : memref<88x128xf32, #tpu.memory_space<vmem>>, vector<1x96xf32>
    %23 = vector.shape_cast %22 : vector<1x96xf32> to vector<96xf32>
    %c40 = arith.constant 40 : index
    %c0_18 = arith.constant 0 : index
    %24 = vector.load %arg2[%c40, %c0_18] : memref<88x128xf32, #tpu.memory_space<vmem>>, vector<1x32xf32>
    %25 = vector.shape_cast %24 : vector<1x32xf32> to vector<32xf32>
    %c41 = arith.constant 41 : index
    %c0_19 = arith.constant 0 : index
    %26 = vector.load %arg2[%c41, %c0_19] : memref<88x128xf32, #tpu.memory_space<vmem>>, vector<1x32xf32>
    %27 = vector.shape_cast %26 : vector<1x32xf32> to vector<32xf32>
    %c48 = arith.constant 48 : index
    %c0_20 = arith.constant 0 : index
    %28 = vector.load %arg2[%c48, %c0_20] : memref<88x128xf32, #tpu.memory_space<vmem>>, vector<32x4xf32>
    %c80 = arith.constant 80 : index
    %c0_21 = arith.constant 0 : index
    %29 = vector.load %arg2[%c80, %c0_21] : memref<88x128xf32, #tpu.memory_space<vmem>>, vector<1x4xf32>
    %30 = vector.shape_cast %29 : vector<1x4xf32> to vector<4xf32>
    %31 = vector.broadcast %13 : f32 to vector<8x8xf32>
    %32 = arith.mulf %10, %31 : vector<8x8xf32>
    %33 = vector.broadcast %14 : f32 to vector<8x8xf32>
    %34 = arith.addf %32, %33 : vector<8x8xf32>
    %cst_22 = arith.constant 0.000000e+00 : f32
    %35 = vector.broadcast %cst_22 : f32 to vector<8x8xf32>
    %36 = arith.maximumf %34, %35 : vector<8x8xf32>
    %cst_23 = arith.constant 0.000000e+00 : f32
    %37 = vector.broadcast %cst_23 : f32 to vector<8x8xf32>
    %38 = arith.subf %37, %36 : vector<8x8xf32>
    %39 = math.exp %38 : vector<8x8xf32>
    %40 = arith.mulf %8, %4 : vector<8x8xf32>
    %cst_24 = arith.constant 1.000000e+00 : f32
    %41 = vector.broadcast %cst_24 : f32 to vector<8x8xf32>
    %42 = arith.subf %41, %8 : vector<8x8xf32>
    %43 = arith.mulf %39, %6 : vector<8x8xf32>
    %cst_25 = arith.constant 1.000000e+00 : f32
    %44 = vector.broadcast %cst_25 : f32 to vector<8x8xf32>
    %45 = arith.subf %44, %39 : vector<8x8xf32>
    %46 = arith.mulf %45, %12 : vector<8x8xf32>
    %47 = arith.addf %43, %46 : vector<8x8xf32>
    %48 = arith.mulf %42, %47 : vector<8x8xf32>
    %49 = arith.addf %40, %48 : vector<8x8xf32>
    %50 = vector.shape_cast %10 : vector<8x8xf32> to vector<8x8x1xf32>
    %51 = vector.shape_cast %25 : vector<32xf32> to vector<1x1x32xf32>
    %52 = vector.broadcast %50 : vector<8x8x1xf32> to vector<8x8x32xf32>
    %53 = vector.broadcast %51 : vector<1x1x32xf32> to vector<8x8x32xf32>
    %54 = arith.mulf %52, %53 : vector<8x8x32xf32>
    %55 = vector.shape_cast %27 : vector<32xf32> to vector<1x1x32xf32>
    %56 = vector.broadcast %55 : vector<1x1x32xf32> to vector<8x8x32xf32>
    %57 = arith.addf %54, %56 : vector<8x8x32xf32>
    %cst_26 = arith.constant 0.000000e+00 : f32
    %58 = vector.broadcast %cst_26 : f32 to vector<8x8x32xf32>
    %59 = arith.maximumf %57, %58 : vector<8x8x32xf32>
    %cst_27 = arith.constant 0.000000e+00 : f32
    %60 = vector.broadcast %cst_27 : f32 to vector<8x8x32xf32>
    %61 = arith.subf %60, %59 : vector<8x8x32xf32>
    %62 = math.exp %61 : vector<8x8x32xf32>
    %c0_28 = arith.constant 0 : index
    %c0_29 = arith.constant 0 : index
    %c0_30 = arith.constant 0 : index
    %63 = vector.load %arg5[%c0_28, %c0_29, %c0_30] : memref<8x8x32xf32, #tpu.memory_space<vmem>>, vector<8x8x32xf32>
    tpu.vector_store %arg5[%c0_28, %c0_29, %c0_30], %62 {strides = array<i32>} : memref<8x8x32xf32, #tpu.memory_space<vmem>>, vector<8x8x32xf32>,
    %64 = tpu.iota {dimensions = array<i32: 1>} : vector<1x96xi32>
    %c64_i32 = arith.constant 64 : i32
    %65 = vector.broadcast %c64_i32 : i32 to vector<1x96xi32>
    %66 = arith.cmpi slt, %64, %65 : vector<1x96xi32>
    %cst_31 = arith.constant 0.000000e+00 : f32
    %67 = vector.shape_cast %23 : vector<96xf32> to vector<1x96xf32>
    %68 = vector.broadcast %cst_31 : f32 to vector<1x96xf32>
    %69 = arith.select %66, %67, %68 : vector<1x96xi1>, vector<1x96xf32>
    %70 = vector.shape_cast %21 : vector<96xf32> to vector<1x96xf32>
    %71 = arith.addf %70, %69 : vector<1x96xf32>
    %72 = vector.shape_cast %49 : vector<8x8xf32> to vector<8x8x1xf32>
    %73 = vector.shape_cast %17 : vector<96xf32> to vector<1x1x96xf32>
    %74 = vector.broadcast %72 : vector<8x8x1xf32> to vector<8x8x96xf32>
    %75 = vector.broadcast %73 : vector<1x1x96xf32> to vector<8x8x96xf32>
    %76 = arith.mulf %74, %75 : vector<8x8x96xf32>
    %77 = vector.shape_cast %8 : vector<8x8xf32> to vector<8x8x1xf32>
    %78 = vector.shape_cast %19 : vector<96xf32> to vector<1x1x96xf32>
    %79 = vector.broadcast %77 : vector<8x8x1xf32> to vector<8x8x96xf32>
    %80 = vector.broadcast %78 : vector<1x1x96xf32> to vector<8x8x96xf32>
    %81 = arith.mulf %79, %80 : vector<8x8x96xf32>
    %82 = arith.addf %76, %81 : vector<8x8x96xf32>
    %83 = vector.shape_cast %71 : vector<1x96xf32> to vector<1x1x96xf32>
    %84 = vector.broadcast %83 : vector<1x1x96xf32> to vector<8x8x96xf32>
    %85 = arith.addf %82, %84 : vector<8x8x96xf32>
    %c0_32 = arith.constant 0 : index
    %c0_33 = arith.constant 0 : index
    %c0_34 = arith.constant 0 : index
    %86 = vector.load %arg4[%c0_32, %c0_33, %c0_34] : memref<8x8x96xf32, #tpu.memory_space<vmem>>, vector<8x8x96xf32>
    tpu.vector_store %arg4[%c0_32, %c0_33, %c0_34], %85 {strides = array<i32>} : memref<8x8x96xf32, #tpu.memory_space<vmem>>, vector<8x8x96xf32>,
    %87 = vector.extract_strided_slice %23 {offsets = [64], sizes = [32], strides = [1]} : vector<96xf32> to vector<32xf32>
    %88 = vector.shape_cast %87 : vector<32xf32> to vector<1x32xf32>
    %89 = vector.broadcast %88 : vector<1x32xf32> to vector<8x32xf32>
    %90 = arith.truncf %15 : vector<32x96xf32> to vector<32x96xbf16>
    %cst_35 = arith.constant 0.000000e+00 : f32
    %91 = vector.broadcast %cst_35 : f32 to vector<8x32xf32>
    %c0_36 = arith.constant 0 : index
    %c0_37 = arith.constant 0 : index
    %c0_38 = arith.constant 0 : index
    %92 = vector.load %arg5[%c0_36, %c0_37, %c0_38] : memref<8x8x32xf32, #tpu.memory_space<vmem>>, vector<1x8x32xf32>
    %93 = vector.shape_cast %92 : vector<1x8x32xf32> to vector<8x32xf32>
    %94 = arith.mulf %93, %91 : vector<8x32xf32>
    %95 = arith.truncf %94 : vector<8x32xf32> to vector<8x32xbf16>
    %cst_39 = arith.constant dense<0.000000e+00> : vector<8x96xf32>
    %96 = tpu.matmul %95, %90, %cst_39 {dimension_numbers = #tpu.dot_dimension_numbers<[1], [0], [0], [1], [0, 0, 1, 1], [], []>} : vector<8x32xbf16>, vector<32x96xbf16>, vector<8x96xf32> -> vector<8x96xf32>
    %c0_40 = arith.constant 0 : index
    %c0_41 = arith.constant 0 : index
    %c0_42 = arith.constant 0 : index
    %97 = vector.load %arg4[%c0_40, %c0_41, %c0_42] : memref<8x8x96xf32, #tpu.memory_space<vmem>>, vector<1x8x96xf32>
    %98 = vector.shape_cast %97 : vector<1x8x96xf32> to vector<8x96xf32>
    %99 = vector.extract_strided_slice %98 {offsets = [0, 0], sizes = [8, 64], strides = [1, 1]} : vector<8x96xf32> to vector<8x64xf32>
    %100 = vector.extract_strided_slice %96 {offsets = [0, 0], sizes = [8, 64], strides = [1, 1]} : vector<8x96xf32> to vector<8x64xf32>
    %101 = arith.addf %99, %100 : vector<8x64xf32>
    %102 = arith.negf %101 : vector<8x64xf32>
    %103 = math.exp %102 : vector<8x64xf32>
    %cst_43 = arith.constant 1.000000e+00 : f32
    %104 = vector.broadcast %cst_43 : f32 to vector<8x64xf32>
    %105 = arith.addf %104, %103 : vector<8x64xf32>
    %106 = arith.divf %104, %105 : vector<8x64xf32>
    %107 = vector.extract_strided_slice %106 {offsets = [0, 0], sizes = [8, 32], strides = [1, 1]} : vector<8x64xf32> to vector<8x32xf32>
    %108 = vector.extract_strided_slice %106 {offsets = [0, 32], sizes = [8, 32], strides = [1, 1]} : vector<8x64xf32> to vector<8x32xf32>
    %109 = vector.extract_strided_slice %98 {offsets = [0, 64], sizes = [8, 32], strides = [1, 1]} : vector<8x96xf32> to vector<8x32xf32>
    %110 = vector.extract_strided_slice %96 {offsets = [0, 64], sizes = [8, 32], strides = [1, 1]} : vector<8x96xf32> to vector<8x32xf32>
    %111 = arith.addf %110, %89 : vector<8x32xf32>
    %112 = arith.mulf %107, %111 : vector<8x32xf32>
    %113 = arith.addf %109, %112 : vector<8x32xf32>
    %114 = math.tanh %113 : vector<8x32xf32>
    %cst_44 = arith.constant 1.000000e+00 : f32
    %115 = vector.broadcast %cst_44 : f32 to vector<8x32xf32>
    %116 = arith.subf %115, %108 : vector<8x32xf32>
    %117 = arith.mulf %116, %114 : vector<8x32xf32>
    %118 = arith.mulf %108, %94 : vector<8x32xf32>
    %119 = arith.addf %117, %118 : vector<8x32xf32>
    %c1_45 = arith.constant 1 : index
    %c0_46 = arith.constant 0 : index
    %c0_47 = arith.constant 0 : index
    %120 = vector.load %arg5[%c1_45, %c0_46, %c0_47] : memref<8x8x32xf32, #tpu.memory_space<vmem>>, vector<1x8x32xf32>
    %121 = vector.shape_cast %120 : vector<1x8x32xf32> to vector<8x32xf32>
    %122 = arith.mulf %121, %119 : vector<8x32xf32>
    %123 = arith.truncf %122 : vector<8x32xf32> to vector<8x32xbf16>
    %cst_48 = arith.constant dense<0.000000e+00> : vector<8x96xf32>
    %124 = tpu.matmul %123, %90, %cst_48 {dimension_numbers = #tpu.dot_dimension_numbers<[1], [0], [0], [1], [0, 0, 1, 1], [], []>} : vector<8x32xbf16>, vector<32x96xbf16>, vector<8x96xf32> -> vector<8x96xf32>
    %c1_49 = arith.constant 1 : index
    %c0_50 = arith.constant 0 : index
    %c0_51 = arith.constant 0 : index
    %125 = vector.load %arg4[%c1_49, %c0_50, %c0_51] : memref<8x8x96xf32, #tpu.memory_space<vmem>>, vector<1x8x96xf32>
    %126 = vector.shape_cast %125 : vector<1x8x96xf32> to vector<8x96xf32>
    %127 = vector.extract_strided_slice %126 {offsets = [0, 0], sizes = [8, 64], strides = [1, 1]} : vector<8x96xf32> to vector<8x64xf32>
    %128 = vector.extract_strided_slice %124 {offsets = [0, 0], sizes = [8, 64], strides = [1, 1]} : vector<8x96xf32> to vector<8x64xf32>
    %129 = arith.addf %127, %128 : vector<8x64xf32>
    %130 = arith.negf %129 : vector<8x64xf32>
    %131 = math.exp %130 : vector<8x64xf32>
    %cst_52 = arith.constant 1.000000e+00 : f32
    %132 = vector.broadcast %cst_52 : f32 to vector<8x64xf32>
    %133 = arith.addf %132, %131 : vector<8x64xf32>
    %134 = arith.divf %132, %133 : vector<8x64xf32>
    %135 = vector.extract_strided_slice %134 {offsets = [0, 0], sizes = [8, 32], strides = [1, 1]} : vector<8x64xf32> to vector<8x32xf32>
    %136 = vector.extract_strided_slice %134 {offsets = [0, 32], sizes = [8, 32], strides = [1, 1]} : vector<8x64xf32> to vector<8x32xf32>
    %137 = vector.extract_strided_slice %126 {offsets = [0, 64], sizes = [8, 32], strides = [1, 1]} : vector<8x96xf32> to vector<8x32xf32>
    %138 = vector.extract_strided_slice %124 {offsets = [0, 64], sizes = [8, 32], strides = [1, 1]} : vector<8x96xf32> to vector<8x32xf32>
    %139 = arith.addf %138, %89 : vector<8x32xf32>
    %140 = arith.mulf %135, %139 : vector<8x32xf32>
    %141 = arith.addf %137, %140 : vector<8x32xf32>
    %142 = math.tanh %141 : vector<8x32xf32>
    %cst_53 = arith.constant 1.000000e+00 : f32
    %143 = vector.broadcast %cst_53 : f32 to vector<8x32xf32>
    %144 = arith.subf %143, %136 : vector<8x32xf32>
    %145 = arith.mulf %144, %142 : vector<8x32xf32>
    %146 = arith.mulf %136, %122 : vector<8x32xf32>
    %147 = arith.addf %145, %146 : vector<8x32xf32>
    %c2_54 = arith.constant 2 : index
    %c0_55 = arith.constant 0 : index
    %c0_56 = arith.constant 0 : index
    %148 = vector.load %arg5[%c2_54, %c0_55, %c0_56] : memref<8x8x32xf32, #tpu.memory_space<vmem>>, vector<1x8x32xf32>
    %149 = vector.shape_cast %148 : vector<1x8x32xf32> to vector<8x32xf32>
    %150 = arith.mulf %149, %147 : vector<8x32xf32>
    %151 = arith.truncf %150 : vector<8x32xf32> to vector<8x32xbf16>
    %cst_57 = arith.constant dense<0.000000e+00> : vector<8x96xf32>
    %152 = tpu.matmul %151, %90, %cst_57 {dimension_numbers = #tpu.dot_dimension_numbers<[1], [0], [0], [1], [0, 0, 1, 1], [], []>} : vector<8x32xbf16>, vector<32x96xbf16>, vector<8x96xf32> -> vector<8x96xf32>
    %c2_58 = arith.constant 2 : index
    %c0_59 = arith.constant 0 : index
    %c0_60 = arith.constant 0 : index
    %153 = vector.load %arg4[%c2_58, %c0_59, %c0_60] : memref<8x8x96xf32, #tpu.memory_space<vmem>>, vector<1x8x96xf32>
    %154 = vector.shape_cast %153 : vector<1x8x96xf32> to vector<8x96xf32>
    %155 = vector.extract_strided_slice %154 {offsets = [0, 0], sizes = [8, 64], strides = [1, 1]} : vector<8x96xf32> to vector<8x64xf32>
    %156 = vector.extract_strided_slice %152 {offsets = [0, 0], sizes = [8, 64], strides = [1, 1]} : vector<8x96xf32> to vector<8x64xf32>
    %157 = arith.addf %155, %156 : vector<8x64xf32>
    %158 = arith.negf %157 : vector<8x64xf32>
    %159 = math.exp %158 : vector<8x64xf32>
    %cst_61 = arith.constant 1.000000e+00 : f32
    %160 = vector.broadcast %cst_61 : f32 to vector<8x64xf32>
    %161 = arith.addf %160, %159 : vector<8x64xf32>
    %162 = arith.divf %160, %161 : vector<8x64xf32>
    %163 = vector.extract_strided_slice %162 {offsets = [0, 0], sizes = [8, 32], strides = [1, 1]} : vector<8x64xf32> to vector<8x32xf32>
    %164 = vector.extract_strided_slice %162 {offsets = [0, 32], sizes = [8, 32], strides = [1, 1]} : vector<8x64xf32> to vector<8x32xf32>
    %165 = vector.extract_strided_slice %154 {offsets = [0, 64], sizes = [8, 32], strides = [1, 1]} : vector<8x96xf32> to vector<8x32xf32>
    %166 = vector.extract_strided_slice %152 {offsets = [0, 64], sizes = [8, 32], strides = [1, 1]} : vector<8x96xf32> to vector<8x32xf32>
    %167 = arith.addf %166, %89 : vector<8x32xf32>
    %168 = arith.mulf %163, %167 : vector<8x32xf32>
    %169 = arith.addf %165, %168 : vector<8x32xf32>
    %170 = math.tanh %169 : vector<8x32xf32>
    %cst_62 = arith.constant 1.000000e+00 : f32
    %171 = vector.broadcast %cst_62 : f32 to vector<8x32xf32>
    %172 = arith.subf %171, %164 : vector<8x32xf32>
    %173 = arith.mulf %172, %170 : vector<8x32xf32>
    %174 = arith.mulf %164, %150 : vector<8x32xf32>
    %175 = arith.addf %173, %174 : vector<8x32xf32>
    %c3_63 = arith.constant 3 : index
    %c0_64 = arith.constant 0 : index
    %c0_65 = arith.constant 0 : index
    %176 = vector.load %arg5[%c3_63, %c0_64, %c0_65] : memref<8x8x32xf32, #tpu.memory_space<vmem>>, vector<1x8x32xf32>
    %177 = vector.shape_cast %176 : vector<1x8x32xf32> to vector<8x32xf32>
    %178 = arith.mulf %177, %175 : vector<8x32xf32>
    %179 = arith.truncf %178 : vector<8x32xf32> to vector<8x32xbf16>
    %cst_66 = arith.constant dense<0.000000e+00> : vector<8x96xf32>
    %180 = tpu.matmul %179, %90, %cst_66 {dimension_numbers = #tpu.dot_dimension_numbers<[1], [0], [0], [1], [0, 0, 1, 1], [], []>} : vector<8x32xbf16>, vector<32x96xbf16>, vector<8x96xf32> -> vector<8x96xf32>
    %c3_67 = arith.constant 3 : index
    %c0_68 = arith.constant 0 : index
    %c0_69 = arith.constant 0 : index
    %181 = vector.load %arg4[%c3_67, %c0_68, %c0_69] : memref<8x8x96xf32, #tpu.memory_space<vmem>>, vector<1x8x96xf32>
    %182 = vector.shape_cast %181 : vector<1x8x96xf32> to vector<8x96xf32>
    %183 = vector.extract_strided_slice %182 {offsets = [0, 0], sizes = [8, 64], strides = [1, 1]} : vector<8x96xf32> to vector<8x64xf32>
    %184 = vector.extract_strided_slice %180 {offsets = [0, 0], sizes = [8, 64], strides = [1, 1]} : vector<8x96xf32> to vector<8x64xf32>
    %185 = arith.addf %183, %184 : vector<8x64xf32>
    %186 = arith.negf %185 : vector<8x64xf32>
    %187 = math.exp %186 : vector<8x64xf32>
    %cst_70 = arith.constant 1.000000e+00 : f32
    %188 = vector.broadcast %cst_70 : f32 to vector<8x64xf32>
    %189 = arith.addf %188, %187 : vector<8x64xf32>
    %190 = arith.divf %188, %189 : vector<8x64xf32>
    %191 = vector.extract_strided_slice %190 {offsets = [0, 0], sizes = [8, 32], strides = [1, 1]} : vector<8x64xf32> to vector<8x32xf32>
    %192 = vector.extract_strided_slice %190 {offsets = [0, 32], sizes = [8, 32], strides = [1, 1]} : vector<8x64xf32> to vector<8x32xf32>
    %193 = vector.extract_strided_slice %182 {offsets = [0, 64], sizes = [8, 32], strides = [1, 1]} : vector<8x96xf32> to vector<8x32xf32>
    %194 = vector.extract_strided_slice %180 {offsets = [0, 64], sizes = [8, 32], strides = [1, 1]} : vector<8x96xf32> to vector<8x32xf32>
    %195 = arith.addf %194, %89 : vector<8x32xf32>
    %196 = arith.mulf %191, %195 : vector<8x32xf32>
    %197 = arith.addf %193, %196 : vector<8x32xf32>
    %198 = math.tanh %197 : vector<8x32xf32>
    %cst_71 = arith.constant 1.000000e+00 : f32
    %199 = vector.broadcast %cst_71 : f32 to vector<8x32xf32>
    %200 = arith.subf %199, %192 : vector<8x32xf32>
    %201 = arith.mulf %200, %198 : vector<8x32xf32>
    %202 = arith.mulf %192, %178 : vector<8x32xf32>
    %203 = arith.addf %201, %202 : vector<8x32xf32>
    %c4_72 = arith.constant 4 : index
    %c0_73 = arith.constant 0 : index
    %c0_74 = arith.constant 0 : index
    %204 = vector.load %arg5[%c4_72, %c0_73, %c0_74] : memref<8x8x32xf32, #tpu.memory_space<vmem>>, vector<1x8x32xf32>
    %205 = vector.shape_cast %204 : vector<1x8x32xf32> to vector<8x32xf32>
    %206 = arith.mulf %205, %203 : vector<8x32xf32>
    %207 = arith.truncf %206 : vector<8x32xf32> to vector<8x32xbf16>
    %cst_75 = arith.constant dense<0.000000e+00> : vector<8x96xf32>
    %208 = tpu.matmul %207, %90, %cst_75 {dimension_numbers = #tpu.dot_dimension_numbers<[1], [0], [0], [1], [0, 0, 1, 1], [], []>} : vector<8x32xbf16>, vector<32x96xbf16>, vector<8x96xf32> -> vector<8x96xf32>
    %c4_76 = arith.constant 4 : index
    %c0_77 = arith.constant 0 : index
    %c0_78 = arith.constant 0 : index
    %209 = vector.load %arg4[%c4_76, %c0_77, %c0_78] : memref<8x8x96xf32, #tpu.memory_space<vmem>>, vector<1x8x96xf32>
    %210 = vector.shape_cast %209 : vector<1x8x96xf32> to vector<8x96xf32>
    %211 = vector.extract_strided_slice %210 {offsets = [0, 0], sizes = [8, 64], strides = [1, 1]} : vector<8x96xf32> to vector<8x64xf32>
    %212 = vector.extract_strided_slice %208 {offsets = [0, 0], sizes = [8, 64], strides = [1, 1]} : vector<8x96xf32> to vector<8x64xf32>
    %213 = arith.addf %211, %212 : vector<8x64xf32>
    %214 = arith.negf %213 : vector<8x64xf32>
    %215 = math.exp %214 : vector<8x64xf32>
    %cst_79 = arith.constant 1.000000e+00 : f32
    %216 = vector.broadcast %cst_79 : f32 to vector<8x64xf32>
    %217 = arith.addf %216, %215 : vector<8x64xf32>
    %218 = arith.divf %216, %217 : vector<8x64xf32>
    %219 = vector.extract_strided_slice %218 {offsets = [0, 0], sizes = [8, 32], strides = [1, 1]} : vector<8x64xf32> to vector<8x32xf32>
    %220 = vector.extract_strided_slice %218 {offsets = [0, 32], sizes = [8, 32], strides = [1, 1]} : vector<8x64xf32> to vector<8x32xf32>
    %221 = vector.extract_strided_slice %210 {offsets = [0, 64], sizes = [8, 32], strides = [1, 1]} : vector<8x96xf32> to vector<8x32xf32>
    %222 = vector.extract_strided_slice %208 {offsets = [0, 64], sizes = [8, 32], strides = [1, 1]} : vector<8x96xf32> to vector<8x32xf32>
    %223 = arith.addf %222, %89 : vector<8x32xf32>
    %224 = arith.mulf %219, %223 : vector<8x32xf32>
    %225 = arith.addf %221, %224 : vector<8x32xf32>
    %226 = math.tanh %225 : vector<8x32xf32>
    %cst_80 = arith.constant 1.000000e+00 : f32
    %227 = vector.broadcast %cst_80 : f32 to vector<8x32xf32>
    %228 = arith.subf %227, %220 : vector<8x32xf32>
    %229 = arith.mulf %228, %226 : vector<8x32xf32>
    %230 = arith.mulf %220, %206 : vector<8x32xf32>
    %231 = arith.addf %229, %230 : vector<8x32xf32>
    %c5 = arith.constant 5 : index
    %c0_81 = arith.constant 0 : index
    %c0_82 = arith.constant 0 : index
    %232 = vector.load %arg5[%c5, %c0_81, %c0_82] : memref<8x8x32xf32, #tpu.memory_space<vmem>>, vector<1x8x32xf32>
    %233 = vector.shape_cast %232 : vector<1x8x32xf32> to vector<8x32xf32>
    %234 = arith.mulf %233, %231 : vector<8x32xf32>
    %235 = arith.truncf %234 : vector<8x32xf32> to vector<8x32xbf16>
    %cst_83 = arith.constant dense<0.000000e+00> : vector<8x96xf32>
    %236 = tpu.matmul %235, %90, %cst_83 {dimension_numbers = #tpu.dot_dimension_numbers<[1], [0], [0], [1], [0, 0, 1, 1], [], []>} : vector<8x32xbf16>, vector<32x96xbf16>, vector<8x96xf32> -> vector<8x96xf32>
    %c5_84 = arith.constant 5 : index
    %c0_85 = arith.constant 0 : index
    %c0_86 = arith.constant 0 : index
    %237 = vector.load %arg4[%c5_84, %c0_85, %c0_86] : memref<8x8x96xf32, #tpu.memory_space<vmem>>, vector<1x8x96xf32>
    %238 = vector.shape_cast %237 : vector<1x8x96xf32> to vector<8x96xf32>
    %239 = vector.extract_strided_slice %238 {offsets = [0, 0], sizes = [8, 64], strides = [1, 1]} : vector<8x96xf32> to vector<8x64xf32>
    %240 = vector.extract_strided_slice %236 {offsets = [0, 0], sizes = [8, 64], strides = [1, 1]} : vector<8x96xf32> to vector<8x64xf32>
    %241 = arith.addf %239, %240 : vector<8x64xf32>
    %242 = arith.negf %241 : vector<8x64xf32>
    %243 = math.exp %242 : vector<8x64xf32>
    %cst_87 = arith.constant 1.000000e+00 : f32
    %244 = vector.broadcast %cst_87 : f32 to vector<8x64xf32>
    %245 = arith.addf %244, %243 : vector<8x64xf32>
    %246 = arith.divf %244, %245 : vector<8x64xf32>
    %247 = vector.extract_strided_slice %246 {offsets = [0, 0], sizes = [8, 32], strides = [1, 1]} : vector<8x64xf32> to vector<8x32xf32>
    %248 = vector.extract_strided_slice %246 {offsets = [0, 32], sizes = [8, 32], strides = [1, 1]} : vector<8x64xf32> to vector<8x32xf32>
    %249 = vector.extract_strided_slice %238 {offsets = [0, 64], sizes = [8, 32], strides = [1, 1]} : vector<8x96xf32> to vector<8x32xf32>
    %250 = vector.extract_strided_slice %236 {offsets = [0, 64], sizes = [8, 32], strides = [1, 1]} : vector<8x96xf32> to vector<8x32xf32>
    %251 = arith.addf %250, %89 : vector<8x32xf32>
    %252 = arith.mulf %247, %251 : vector<8x32xf32>
    %253 = arith.addf %249, %252 : vector<8x32xf32>
    %254 = math.tanh %253 : vector<8x32xf32>
    %cst_88 = arith.constant 1.000000e+00 : f32
    %255 = vector.broadcast %cst_88 : f32 to vector<8x32xf32>
    %256 = arith.subf %255, %248 : vector<8x32xf32>
    %257 = arith.mulf %256, %254 : vector<8x32xf32>
    %258 = arith.mulf %248, %234 : vector<8x32xf32>
    %259 = arith.addf %257, %258 : vector<8x32xf32>
    %c6 = arith.constant 6 : index
    %c0_89 = arith.constant 0 : index
    %c0_90 = arith.constant 0 : index
    %260 = vector.load %arg5[%c6, %c0_89, %c0_90] : memref<8x8x32xf32, #tpu.memory_space<vmem>>, vector<1x8x32xf32>
    %261 = vector.shape_cast %260 : vector<1x8x32xf32> to vector<8x32xf32>
    %262 = arith.mulf %261, %259 : vector<8x32xf32>
    %263 = arith.truncf %262 : vector<8x32xf32> to vector<8x32xbf16>
    %cst_91 = arith.constant dense<0.000000e+00> : vector<8x96xf32>
    %264 = tpu.matmul %263, %90, %cst_91 {dimension_numbers = #tpu.dot_dimension_numbers<[1], [0], [0], [1], [0, 0, 1, 1], [], []>} : vector<8x32xbf16>, vector<32x96xbf16>, vector<8x96xf32> -> vector<8x96xf32>
    %c6_92 = arith.constant 6 : index
    %c0_93 = arith.constant 0 : index
    %c0_94 = arith.constant 0 : index
    %265 = vector.load %arg4[%c6_92, %c0_93, %c0_94] : memref<8x8x96xf32, #tpu.memory_space<vmem>>, vector<1x8x96xf32>
    %266 = vector.shape_cast %265 : vector<1x8x96xf32> to vector<8x96xf32>
    %267 = vector.extract_strided_slice %266 {offsets = [0, 0], sizes = [8, 64], strides = [1, 1]} : vector<8x96xf32> to vector<8x64xf32>
    %268 = vector.extract_strided_slice %264 {offsets = [0, 0], sizes = [8, 64], strides = [1, 1]} : vector<8x96xf32> to vector<8x64xf32>
    %269 = arith.addf %267, %268 : vector<8x64xf32>
    %270 = arith.negf %269 : vector<8x64xf32>
    %271 = math.exp %270 : vector<8x64xf32>
    %cst_95 = arith.constant 1.000000e+00 : f32
    %272 = vector.broadcast %cst_95 : f32 to vector<8x64xf32>
    %273 = arith.addf %272, %271 : vector<8x64xf32>
    %274 = arith.divf %272, %273 : vector<8x64xf32>
    %275 = vector.extract_strided_slice %274 {offsets = [0, 0], sizes = [8, 32], strides = [1, 1]} : vector<8x64xf32> to vector<8x32xf32>
    %276 = vector.extract_strided_slice %274 {offsets = [0, 32], sizes = [8, 32], strides = [1, 1]} : vector<8x64xf32> to vector<8x32xf32>
    %277 = vector.extract_strided_slice %266 {offsets = [0, 64], sizes = [8, 32], strides = [1, 1]} : vector<8x96xf32> to vector<8x32xf32>
    %278 = vector.extract_strided_slice %264 {offsets = [0, 64], sizes = [8, 32], strides = [1, 1]} : vector<8x96xf32> to vector<8x32xf32>
    %279 = arith.addf %278, %89 : vector<8x32xf32>
    %280 = arith.mulf %275, %279 : vector<8x32xf32>
    %281 = arith.addf %277, %280 : vector<8x32xf32>
    %282 = math.tanh %281 : vector<8x32xf32>
    %cst_96 = arith.constant 1.000000e+00 : f32
    %283 = vector.broadcast %cst_96 : f32 to vector<8x32xf32>
    %284 = arith.subf %283, %276 : vector<8x32xf32>
    %285 = arith.mulf %284, %282 : vector<8x32xf32>
    %286 = arith.mulf %276, %262 : vector<8x32xf32>
    %287 = arith.addf %285, %286 : vector<8x32xf32>
    %c7 = arith.constant 7 : index
    %c0_97 = arith.constant 0 : index
    %c0_98 = arith.constant 0 : index
    %288 = vector.load %arg5[%c7, %c0_97, %c0_98] : memref<8x8x32xf32, #tpu.memory_space<vmem>>, vector<1x8x32xf32>
    %289 = vector.shape_cast %288 : vector<1x8x32xf32> to vector<8x32xf32>
    %290 = arith.mulf %289, %287 : vector<8x32xf32>
    %291 = arith.truncf %290 : vector<8x32xf32> to vector<8x32xbf16>
    %cst_99 = arith.constant dense<0.000000e+00> : vector<8x96xf32>
    %292 = tpu.matmul %291, %90, %cst_99 {dimension_numbers = #tpu.dot_dimension_numbers<[1], [0], [0], [1], [0, 0, 1, 1], [], []>} : vector<8x32xbf16>, vector<32x96xbf16>, vector<8x96xf32> -> vector<8x96xf32>
    %c7_100 = arith.constant 7 : index
    %c0_101 = arith.constant 0 : index
    %c0_102 = arith.constant 0 : index
    %293 = vector.load %arg4[%c7_100, %c0_101, %c0_102] : memref<8x8x96xf32, #tpu.memory_space<vmem>>, vector<1x8x96xf32>
    %294 = vector.shape_cast %293 : vector<1x8x96xf32> to vector<8x96xf32>
    %295 = vector.extract_strided_slice %294 {offsets = [0, 0], sizes = [8, 64], strides = [1, 1]} : vector<8x96xf32> to vector<8x64xf32>
    %296 = vector.extract_strided_slice %292 {offsets = [0, 0], sizes = [8, 64], strides = [1, 1]} : vector<8x96xf32> to vector<8x64xf32>
    %297 = arith.addf %295, %296 : vector<8x64xf32>
    %298 = arith.negf %297 : vector<8x64xf32>
    %299 = math.exp %298 : vector<8x64xf32>
    %cst_103 = arith.constant 1.000000e+00 : f32
    %300 = vector.broadcast %cst_103 : f32 to vector<8x64xf32>
    %301 = arith.addf %300, %299 : vector<8x64xf32>
    %302 = arith.divf %300, %301 : vector<8x64xf32>
    %303 = vector.extract_strided_slice %302 {offsets = [0, 0], sizes = [8, 32], strides = [1, 1]} : vector<8x64xf32> to vector<8x32xf32>
    %304 = vector.extract_strided_slice %302 {offsets = [0, 32], sizes = [8, 32], strides = [1, 1]} : vector<8x64xf32> to vector<8x32xf32>
    %305 = vector.extract_strided_slice %294 {offsets = [0, 64], sizes = [8, 32], strides = [1, 1]} : vector<8x96xf32> to vector<8x32xf32>
    %306 = vector.extract_strided_slice %292 {offsets = [0, 64], sizes = [8, 32], strides = [1, 1]} : vector<8x96xf32> to vector<8x32xf32>
    %307 = arith.addf %306, %89 : vector<8x32xf32>
    %308 = arith.mulf %303, %307 : vector<8x32xf32>
    %309 = arith.addf %305, %308 : vector<8x32xf32>
    %310 = math.tanh %309 : vector<8x32xf32>
    %cst_104 = arith.constant 1.000000e+00 : f32
    %311 = vector.broadcast %cst_104 : f32 to vector<8x32xf32>
    %312 = arith.subf %311, %304 : vector<8x32xf32>
    %313 = arith.mulf %312, %310 : vector<8x32xf32>
    %314 = arith.mulf %304, %290 : vector<8x32xf32>
    %315 = arith.addf %313, %314 : vector<8x32xf32>
    %cst_105 = arith.constant dense<0.000000e+00> : vector<8x4xf32>
    %316 = tpu.matmul %315, %28, %cst_105 {dimension_numbers = #tpu.dot_dimension_numbers<[1], [0], [0], [1], [0, 0, 1, 1], [], []>} : vector<8x32xf32>, vector<32x4xf32>, vector<8x4xf32> -> vector<8x4xf32>
    %317 = vector.shape_cast %30 : vector<4xf32> to vector<1x4xf32>
    %318 = vector.broadcast %317 : vector<1x4xf32> to vector<8x4xf32>
    %319 = arith.addf %316, %318 : vector<8x4xf32>
    %c0_106 = arith.constant 0 : index
    %c0_107 = arith.constant 0 : index
    %320 = vector.load %arg3[%c0_106, %c0_107] : memref<8x4xf32, #tpu.memory_space<vmem>>, vector<8x4xf32>
    tpu.vector_store %arg3[%c0_106, %c0_107], %319 {strides = array<i32>} : memref<8x4xf32, #tpu.memory_space<vmem>>, vector<8x4xf32>,
    return
  }
}

</mosaic_0001>

<bundles_post_ra>
// kernel: tpu_custom_call.1
= control target key start
LH: loop header
LB: loop body
LE: loop exit
PB: predicated region body
PF: predicated region fallthrough
CT: control target
= control target key end

     0   :  { %8 = vsyncpa [#allocation6], 0  ;;  %s1339_s0 = inlined_call_operand.hbm [shape: f32[2], index: 0, kind: input, shape index: {}]   ;;  %s1340_s1 = inlined_call_operand.hbm [shape: f32[5,8,8], index: 1, kind: input, shape index: {}]   ;;  %s1341_s2 = inlined_call_operand.hbm [shape: f32[88,128], index: 2, kind: input, shape index: {}]   ;;  %s1342_s3 = inlined_call_operand.vmem [shape: f32[8,4], index: 3, kind: output, shape index: {}]  }
   0x1   :  { %9 = vsyncpa [#allocation5], 0  ;;  %s16_s14 = sshll.u32 %s1339_s0, 4  ;;  %s17_s14 = int_to_ptr.hbm [resolvable:$true] %s16_s14 }
   0x2   :  { %10 = vsyncpa [#allocation9], 0  ;;  %s24_s17 = sshll.u32 %s1340_s1, 4  ;;  %s1141_s18 = smov [#allocation4]   ;;  %s25_s17 = int_to_ptr.hbm [resolvable:$true] %s24_s17 }
   0x3   :  { %19 = dma.hbm_to_smem %s17_s14, 16, %s1141_s18, [#allocation6]  }
   0x4   :  { %s1142_s19 = smov [#allocation7]   ;;  %s1143_s21 = smov 128  }
   0x5   :  { %s26_s20 = sshll.u32 %s1142_s19, 4  ;;  %s1144_s22 = smov 8   ;;  %s27_s20 = int_to_ptr.vmem [resolvable:$true] %s26_s20 }
   0x6   :  { %32 = dma.hbm_to_vmem [thread:$0]  %s25_s17, 640, %s27_s20, [#allocation5], %s1143_s21, %s1143_s21, %s1144_s22  }
   0x7   :  { %s37_s25 = sshll.u32 %s1341_s2, 4  ;;  %s1145_s0 = smov [#allocation8]   ;;  %s38_s25 = int_to_ptr.hbm [resolvable:$true] %s37_s25 }
   0x8   :  { %s39_s26 = sshll.u32 %s1145_s0, 4  ;;  %s40_s26 = int_to_ptr.vmem [resolvable:$true] %s39_s26 }
   0x9   :  { %45 = dma.hbm_to_vmem [thread:$0]  %s38_s25, 1408, %s40_s26, [#allocation9], %s1143_s21, %s1143_s21, %s1144_s22  }
   0xa   :  { %1135 = dma.done.wait [#allocation6], 16  }
   0xb   :  { %1136 = vsyncadd [#allocation6], 4294967280 }
   0xc   :  { %1137 = dma.done.wait [#allocation5], 640  }
   0xd   :  { %1138 = vsyncadd [#allocation5], 4294966656 }
   0xe   :  { %1139 = dma.done.wait [#allocation9], 1408  }
   0xf   :  { %1140 = vsyncadd [#allocation9], 4294965888 }
  0x10   :  { %58 = sfence }
  0x11   :  { %v105_v0 = vlaneseq  ;;  %s71_s1 = sld [smem:[#allocation4]]  ;;  %v1179_v2 = vld [vmem:[#allocation7 + $0x18] sm:$0xff]  ;;  %v1181_v4 = vld [vmem:[#allocation7 + $0x10] sm:$0xff]  ;;  %v60_v13 = vld [vmem:[#allocation7] sm:$0xff]  ;;  %vm210_vm1 = vcmask 261120   ;;  %s1146_s2 = smov 32  }
  0x12   :  { %s972_s27 = sld [smem:[#allocation4 + $0x1]]  ;;  %v104_v6 = vperm.slane %v1179_v2, 0  ;;  %v289_v8 = vperm.slane %v1181_v4, 0  ;;  %v64_v14 = vld [vmem:[#allocation7 + $0x8] sm:$0xff]  ;;  %vm61_vm0 = vcmp.ne.f32.partialorder %v60_v13, %v60_v13  ;;  %v70_v16 = vld [vmem:[#allocation7 + $0x20] sm:$0xff]  ;;  %v97_v20 = vsub.f32 1.0, %v1181_v4 }
  0x13   :  { %v106_v1 = vshrl.u32 %v105_v0, 7  ;;  %v62_v19 = vsel %vm61_vm0, -1.0, %v60_v13  ;;  %v75_v27 = vld [vmem:[#allocation8 + $0x10] sm:$0xff]  ;;  %v76_v28 = vld [vmem:[#allocation8 + $0x18] sm:$0xff]  ;;  %v73_v30 = vld [vmem:[#allocation8] sm:$0xff]  ;;  %v220_v41 = vand.u32 127, %v105_v0 }
  0x14   :  { %v96_v22 = vmul.f32 %v1181_v4, %v62_v19  ;;  %v382_v29 = vpack.c.bf16 %v76_v28, %v75_v27  ;;  %v74_v31 = vld [vmem:[#allocation8 + $0x8] sm:$0xff]  ;;  %v80_v42 = vld [vmem:[#allocation8 + $0x23] sm:$0x1]  ;;  %v79_v44 = vld [vmem:[#allocation8 + $0x22] sm:$0x1]  ;;  %vm371_vm3 = vcmask 785408  }
  0x15   :  { %998 = vset.pattern.permute.xlu0 %v106_v1  ;;  %999 = vset.pattern.permute.xlu1 %v106_v1  ;;  %v381_v32 = vpack.c.bf16 %v74_v31, %v73_v30  ;;  %v1191_v33 = vld [vmem:[#allocation8 + $0x28] ss:$0 sm:$0xff]  ;;  %v1193_v34 = vld [vmem:[#allocation8 + $0x29] ss:$0 sm:$0xff]  ;;  %vm221_vm2 = vcmp.lt.s32.totalorder %v220_v41, 64  ;;  %s1147_s28 = smov 64  }
  0x16   :  { %1000 = vset.pattern.permute.xlu2 %v106_v1  ;;  %395 = vmatpush.bf16.msra.mxu0 %v382_v29  ;;  %v222_v45 = vsel %vm221_vm2, %v80_v42, 0.0  ;;  %v1199_v46 = vld [vmem:[#allocation8 + $0x21] ss:$0 sm:$0xff]  ;;  %v1201_v49 = vld [vmem:[#allocation8 + $0x20] ss:$0 sm:$0xff]  ;;  %v111_v63 = vperm.slane %v1179_v2, 1 }
  0x17   :  { %v88_v3 = vstv %s71_s1  ;;  %464 = vmatpush.bf16.msra.mxu1 %v382_v29  ;;  %534 = vmatpush.bf16.msra.mxu2 %v382_v29  ;;  %v223_v48 = vadd.f32 %v222_v45, %v79_v44  ;;  %v1212_v60 = vld [vmem:[#allocation8 + $0x23] ss:$0 sm:$0xff]  ;;  %v296_v1 = vperm.slane %v1181_v4, 1  ;;  %s1148_s29 = smov 96  }
  0x18   :  { %v90_v5 = vstv %s972_s27  ;;  %v89_v7 = vmul.f32 %v88_v3, %v1179_v2  ;;  %604 = vmatpush.bf16.msra.mxu3 %v382_v29 }
  0x19   :  { %v1204_v53 = vperm.slane %v223_v48, 0 }
  0x1a   :  { %v91_v9 = vadd.f32 %v90_v5, %v89_v7  ;;  %396 = vmatpush.bf16.msra.mxu0 %v381_v32 }
  0x1b   :  { %465 = vmatpush.bf16.msra.mxu1 %v381_v32  ;;  %535 = vmatpush.bf16.msra.mxu2 %v381_v32 }
  0x1c   :  { %v92_v10 = vmax.f32 %v91_v9, 0.0  ;;  %605 = vmatpush.bf16.msra.mxu3 %v381_v32 }
  0x1d   :  { %109 = vperm.xlu0 %998, %v104_v6   ;;  %294 = vperm.xlu1 %999, %v289_v8  }
  0x1e   :  { %v93_v11 = vsub.f32 0.0, %v92_v10  ;;  %674 = vmatpush.bf16.msrb.mxu0 %v382_v29 }
  0x1f   :  { %744 = vmatpush.bf16.msrb.mxu1 %v382_v29  ;;  %814 = vmatpush.bf16.msrb.mxu2 %v382_v29 }
  0x20   :  { %v94_v12 = vmul.f32 1.442695, %v93_v11  ;;  %884 = vmatpush.bf16.msrb.mxu3 %v382_v29 }
  0x22   :  { %1007 = vpow2.f32 %v94_v12  ;;  %675 = vmatpush.bf16.msrb.mxu0 %v381_v32 }
  0x23   :  { %745 = vmatpush.bf16.msrb.mxu1 %v381_v32  ;;  %815 = vmatpush.bf16.msrb.mxu2 %v381_v32 }
  0x24   :  { %885 = vmatpush.bf16.msrb.mxu3 %v381_v32 }
  0x28   :  { %v1008_v15 = vpop.eup %1007 }
  0x29   :  { %v98_v17 = vmul.f32 %v1008_v15, %v64_v14  ;;  %v99_v18 = vsub.f32 1.0, %v1008_v15 }
  0x2b   :  { %v100_v21 = vmul.f32 %v99_v18, %v70_v16 }
  0x2d   :  { %v101_v23 = vadd.f32 %v100_v21, %v98_v17 }
  0x2f   :  { %v102_v24 = vmul.f32 %v101_v23, %v97_v20 }
  0x31   :  { %v1188_v25 = vadd.f32 %v102_v24, %v96_v22 }
  0x33   :  { %v224_v26 = vperm.slane %v1188_v25, 0  ;;  %v231_v59 = vperm.slane %v1188_v25, 1 }
  0x35   :  { %229 = vperm.xlu0 %998, %v224_v26  }
  0x8f   :  { %v110_v35 = vpop.permute.xlu0 %109  ;;  %v295_v47 = vpop.permute.xlu1 %294 }
  0x90   :  { %v161_v36 = vmul.f32 %v1191_v33, %v110_v35  ;;  %v346_v50 = vmul.f32 %v1199_v46, %v295_v47 }
  0x92   :  { %v170_v37 = vadd.f32 %v1193_v34, %v161_v36 }
  0x94   :  { %v178_v38 = vmax.f32 %v170_v37, 0.0 }
  0x96   :  { %v186_v39 = vsub.f32 0.0, %v178_v38 }
  0x98   :  { %v194_v40 = vmul.f32 1.442695, %v186_v39 }
  0x9a   :  { %1009 = vpow2.f32 %v194_v40 }
  0xa0   :  { %v1010_v43 = vpop.eup %1009 }
  0xa1   :  { %211 = vst.msk [vmem:[#allocation3] sm:$0xff] %vm210_vm1, %v1010_v43 }
  0xa7   :  { %v230_v51 = vpop.permute.xlu0 %229 }
  0xa8   :  { %v383_v52 = vld [vmem:[#allocation3] sm:$0xff]  ;;  %v281_v54 = vmul.f32 %v1201_v49, %v230_v51 }
  0xa9   :  { %v384_v55 = vmul.f32 0.0, %v383_v52 }
  0xaa   :  { %v354_v56 = vadd.f32 %v346_v50, %v281_v54 }
  0xab   :  { %442 = vrot.lane.b32.xlu0 %v384_v55, %s1146_s2  ;;  %v385_v57 = vpack.c.bf16 %v384_v55, %v384_v55 }
  0xac   :  { %v363_v58 = vadd.f32 %v1204_v53, %v354_v56 }
  0xad   :  { %973 = vmatmul.msk.bf16.vlgmr.msra.gmra.mxu0 %vm210_vm1, %v385_v57 }
  0xae   :  { %372 = vst.msk [vmem:[#allocation2] sm:$0xff] %vm371_vm3, %v363_v58 }
  0xb3   :  { %236 = vperm.xlu0 %998, %v231_v59  }
  0xb5   :  { %v402_v3 = vld [vmem:[#allocation2] sm:$0xff] }
 0x11d   :  { %v443_v21 = vpop.permute.xlu0 %442 }
 0x125   :  { %v237_v27 = vpop.permute.xlu0 %236 }
 0x126   :  { %v282_v30 = vmul.f32 %v1201_v49, %v237_v27 }
 0x12a   :  { %v398_v61 = vpop.f32.mrf.mxu0 }
 0x12b   :  { %v423_v62 = vadd.f32 %v1212_v60, %v398_v61  ;;  %v403_v5 = vadd.f32 %v402_v3, %v398_v61 }
 0x12d   :  { %425 = vrot.lane.b32.xlu1 %v423_v62, %s1147_s28  ;;  %v974_v6 = vmul.f32 -1.442695, %v403_v5 }
 0x12f   :  { %1011 = vpow2.f32 %v974_v6 }
 0x132   :  { %v400_v0 = vpop.f32.mrf.mxu0 }
 0x135   :  { %116 = vperm.xlu1 %999, %v111_v63   ;;  %v1012_v7 = vpop.eup %1011 }
 0x136   :  { %v407_v8 = vadd.f32 1.0, %v1012_v7 }
 0x138   :  { %1013 = vrcp.f32 %v407_v8  ;;  %v419_v14 = vand.u32 2147483648, %v407_v8  ;;  %vm413_vm5 = vweird.f32 %v407_v8  ;;  %v417_v15 = vand.u32 2147483647, %v407_v8 }
 0x13a   :  { %v420_v17 = vor.u32 1.1754944e-38, %v419_v14  ;;  %vm418_vm7 = vcmp.eq.f32.partialorder %v417_v15, 8.507059e+37  ;;  %v303_v14 = vperm.slane %v1181_v4, 2 }
 0x13d   :  { %301 = vperm.xlu1 %999, %v296_v1   ;;  %v238_v1 = vperm.slane %v1188_v25, 2 }
 0x13e   :  { %v1014_v9 = vpop.eup %1013 }
 0x13f   :  { %v409_v10 = vmul.f32 %v1014_v9, %v407_v8  ;;  %vm414_vm4 = vweird.f32 %v1014_v9 }
 0x140   :  { %vm415_vm6 = vmor %vm413_vm5, %vm414_vm4 }
 0x141   :  { %v410_v11 = vsub.f32 1.0, %v409_v10 }
 0x143   :  { %v411_v12 = vmul.f32 %v1014_v9, %v410_v11 }
 0x145   :  { %v412_v13 = vadd.f32 %v1014_v9, %v411_v12 }
 0x147   :  { %v416_v16 = vsel %vm415_vm6, %v1014_v9, %v412_v13  ;;  %v118_v13 = vperm.slane %v1179_v2, 2 }
 0x148   :  { %v421_v19 = vsel %vm418_vm7, %v420_v17, %v416_v16 }
 0x149   :  { %v435_v41 = vsub.f32 1.0, %v421_v19  ;;  %v445_v44 = vmul.f32 %v443_v21, %v421_v19 }
 0x19f   :  { %v426_v18 = vpop.permute.xlu1 %425 }
 0x1a0   :  { %v428_v20 = vmul.f32 %v426_v18, %v421_v19 }
 0x1a2   :  { %430 = vrot.lane.b32.xlu2 %v428_v20, %s1147_s28 }
 0x1a7   :  { %v117_v22 = vpop.permute.xlu1 %116 }
 0x1a8   :  { %v162_v23 = vmul.f32 %v1191_v33, %v117_v22 }
 0x1aa   :  { %v171_v24 = vadd.f32 %v1193_v34, %v162_v23 }
 0x1ac   :  { %v179_v26 = vmax.f32 %v171_v24, 0.0 }
 0x1ae   :  { %v187_v28 = vsub.f32 0.0, %v179_v26 }
 0x1af   :  { %v302_v29 = vpop.permute.xlu1 %301 }
 0x1b0   :  { %v196_v31 = vmul.f32 1.442695, %v187_v28  ;;  %v347_v32 = vmul.f32 %v1199_v46, %v302_v29 }
 0x1b2   :  { %1015 = vpow2.f32 %v196_v31  ;;  %v355_v35 = vadd.f32 %v347_v32, %v282_v30 }
 0x1b4   :  { %v364_v36 = vadd.f32 %v1204_v53, %v355_v35 }
 0x1b6   :  { %373 = vst.msk [vmem:[#allocation2 + $0x8] sm:$0xff] %vm371_vm3, %v364_v36 }
 0x1b8   :  { %v1016_v37 = vpop.eup %1015 }
 0x1b9   :  { %212 = vst.msk [vmem:[#allocation3 + $0x8] sm:$0xff] %vm210_vm1, %v1016_v37 }
 0x1bd   :  { %v472_v56 = vld [vmem:[#allocation2 + $0x8] sm:$0xff] }
 0x1c0   :  { %v448_v47 = vld [vmem:[#allocation3 + $0x8] sm:$0xff] }
 0x1fc   :  { %v431_v38 = vpop.permute.xlu2 %430 }
 0x1fd   :  { %v433_v39 = vadd.f32 %v431_v38, %v402_v3 }
 0x1ff   :  { %1017 = vtanh.f32 %v433_v39 }
 0x205   :  { %v1018_v40 = vpop.eup %1017 }
 0x206   :  { %437 = vrot.lane.b32.xlu2 %v1018_v40, %s1148_s29 }
 0x260   :  { %v438_v42 = vpop.permute.xlu2 %437 }
 0x261   :  { %v440_v43 = vmul.f32 %v438_v42, %v435_v41 }
 0x263   :  { %v446_v45 = vadd.f32 %v445_v44, %v440_v43 }
 0x265   :  { %450 = vrot.lane.b32.xlu2 %v446_v45, %s1148_s29 }
 0x2bf   :  { %v451_v48 = vpop.permute.xlu2 %450 }
 0x2c0   :  { %v453_v50 = vmul.f32 %v451_v48, %v448_v47  ;;  %v245_v48 = vperm.slane %v1188_v25, 3 }
 0x2c2   :  { %v454_v51 = vpack.c.bf16 %v453_v50, %v453_v50 }
 0x2c4   :  { %975 = vmatmul.msk.bf16.vlgmr.msra.gmra.mxu1 %vm210_vm1, %v454_v51 }
 0x341   :  { %v467_v52 = vpop.f32.mrf.mxu1 }
 0x342   :  { %v493_v54 = vadd.f32 %v1212_v60, %v467_v52  ;;  %v473_v57 = vadd.f32 %v472_v56, %v467_v52 }
 0x344   :  { %495 = vrot.lane.b32.xlu2 %v493_v54, %s1147_s28  ;;  %v976_v58 = vmul.f32 -1.442695, %v473_v57 }
 0x346   :  { %1019 = vpow2.f32 %v976_v58 }
 0x349   :  { %v469_v55 = vpop.f32.mrf.mxu1 }
 0x34c   :  { %512 = vrot.lane.b32.xlu2 %v453_v50, %s1146_s2  ;;  %v1020_v59 = vpop.eup %1019 }
 0x34d   :  { %v477_v61 = vadd.f32 1.0, %v1020_v59 }
 0x34f   :  { %1021 = vrcp.f32 %v477_v61  ;;  %v489_v6 = vand.u32 2147483648, %v477_v61  ;;  %vm483_vm9 = vweird.f32 %v477_v61  ;;  %v487_v7 = vand.u32 2147483647, %v477_v61 }
 0x351   :  { %v490_v9 = vor.u32 1.1754944e-38, %v489_v6  ;;  %vm488_vm11 = vcmp.eq.f32.partialorder %v487_v7, 8.507059e+37  ;;  %v125_v7 = vperm.slane %v1179_v2, 3 }
 0x354   :  { %243 = vperm.xlu2 %1000, %v238_v1  }
 0x355   :  { %v1022_v62 = vpop.eup %1021 }
 0x356   :  { %v479_v63 = vmul.f32 %v1022_v62, %v477_v61  ;;  %vm484_vm8 = vweird.f32 %v1022_v62 }
 0x357   :  { %vm485_vm10 = vmor %vm483_vm9, %vm484_vm8 }
 0x358   :  { %v480_v0 = vsub.f32 1.0, %v479_v63 }
 0x35a   :  { %v481_v3 = vmul.f32 %v1022_v62, %v480_v0 }
 0x35c   :  { %v482_v5 = vadd.f32 %v1022_v62, %v481_v3 }
 0x35e   :  { %v486_v8 = vsel %vm485_vm10, %v1022_v62, %v482_v5 }
 0x35f   :  { %v491_v11 = vsel %vm488_vm11, %v490_v9, %v486_v8  ;;  %v310_v8 = vperm.slane %v1181_v4, 3 }
 0x360   :  { %v505_v35 = vsub.f32 1.0, %v491_v11 }
 0x39e   :  { %v496_v10 = vpop.permute.xlu2 %495 }
 0x39f   :  { %v498_v12 = vmul.f32 %v496_v10, %v491_v11 }
 0x3a1   :  { %500 = vrot.lane.b32.xlu0 %v498_v12, %s1147_s28 }
 0x3a6   :  { %v513_v17 = vpop.permute.xlu2 %512 }
 0x3a7   :  { %v515_v37 = vmul.f32 %v513_v17, %v491_v11 }
 0x3a9   :  { %123 = vperm.xlu0 %998, %v118_v13  }
 0x3ae   :  { %v244_v22 = vpop.permute.xlu2 %243 }
 0x3af   :  { %v283_v26 = vmul.f32 %v1201_v49, %v244_v22 }
 0x3b1   :  { %308 = vperm.xlu0 %998, %v303_v14  }
 0x413   :  { %v501_v15 = vpop.permute.xlu0 %500 }
 0x414   :  { %v503_v16 = vadd.f32 %v501_v15, %v472_v56 }
 0x416   :  { %1023 = vtanh.f32 %v503_v16 }
 0x41b   :  { %v124_v18 = vpop.permute.xlu0 %123 }
 0x41c   :  { %v1024_v19 = vpop.eup %1023  ;;  %v163_v20 = vmul.f32 %v1191_v33, %v124_v18 }
 0x41d   :  { %507 = vrot.lane.b32.xlu1 %v1024_v19, %s1148_s29 }
 0x41e   :  { %v172_v21 = vadd.f32 %v1193_v34, %v163_v20 }
 0x420   :  { %v180_v23 = vmax.f32 %v172_v21, 0.0 }
 0x422   :  { %v188_v24 = vsub.f32 0.0, %v180_v23 }
 0x423   :  { %v309_v27 = vpop.permute.xlu0 %308 }
 0x424   :  { %v198_v28 = vmul.f32 1.442695, %v188_v24  ;;  %v348_v29 = vmul.f32 %v1199_v46, %v309_v27 }
 0x426   :  { %1025 = vpow2.f32 %v198_v28  ;;  %v356_v30 = vadd.f32 %v348_v29, %v283_v26 }
 0x428   :  { %v365_v31 = vadd.f32 %v1204_v53, %v356_v30 }
 0x42a   :  { %374 = vst.msk [vmem:[#allocation2 + $0x10] sm:$0xff] %vm371_vm3, %v365_v31 }
 0x42c   :  { %v1026_v32 = vpop.eup %1025 }
 0x42d   :  { %213 = vst.msk [vmem:[#allocation3 + $0x10] sm:$0xff] %vm210_vm1, %v1026_v32 }
 0x431   :  { %v542_v50 = vld [vmem:[#allocation2 + $0x10] sm:$0xff] }
 0x434   :  { %v518_v41 = vld [vmem:[#allocation3 + $0x10] sm:$0xff] }
 0x48f   :  { %v508_v36 = vpop.permute.xlu1 %507 }
 0x490   :  { %v510_v38 = vmul.f32 %v508_v36, %v505_v35 }
 0x492   :  { %v516_v39 = vadd.f32 %v515_v37, %v510_v38 }
 0x494   :  { %520 = vrot.lane.b32.xlu1 %v516_v39, %s1148_s29 }
 0x506   :  { %v521_v40 = vpop.permute.xlu1 %520 }
 0x507   :  { %v523_v42 = vmul.f32 %v521_v40, %v518_v41  ;;  %v252_v41 = vperm.slane %v1188_v25, 4 }
 0x509   :  { %v524_v43 = vpack.c.bf16 %v523_v42, %v523_v42 }
 0x50b   :  { %977 = vmatmul.msk.bf16.vlgmr.msra.gmra.mxu2 %vm210_vm1, %v524_v43 }
 0x58e   :  { %v537_v44 = vpop.f32.mrf.mxu2 }
 0x58f   :  { %v563_v45 = vadd.f32 %v1212_v60, %v537_v44  ;;  %v543_v51 = vadd.f32 %v542_v50, %v537_v44 }
 0x591   :  { %565 = vrot.lane.b32.xlu1 %v563_v45, %s1147_s28  ;;  %v978_v52 = vmul.f32 -1.442695, %v543_v51 }
 0x593   :  { %1027 = vpow2.f32 %v978_v52 }
 0x596   :  { %v539_v47 = vpop.f32.mrf.mxu2 }
 0x599   :  { %582 = vrot.lane.b32.xlu1 %v523_v42, %s1146_s2  ;;  %v1028_v54 = vpop.eup %1027 }
 0x59a   :  { %v547_v55 = vadd.f32 1.0, %v1028_v54 }
 0x59c   :  { %1029 = vrcp.f32 %v547_v55  ;;  %v559_v62 = vand.u32 2147483648, %v547_v55  ;;  %vm553_vm13 = vweird.f32 %v547_v55  ;;  %v557_v63 = vand.u32 2147483647, %v547_v55 }
 0x59e   :  { %v560_v1 = vor.u32 1.1754944e-38, %v559_v62  ;;  %vm558_vm15 = vcmp.eq.f32.partialorder %v557_v63, 8.507059e+37  ;;  %v132_v63 = vperm.slane %v1179_v2, 4 }
 0x5a1   :  { %250 = vperm.xlu1 %999, %v245_v48  }
 0x5a2   :  { %v1030_v56 = vpop.eup %1029 }
 0x5a3   :  { %v549_v57 = vmul.f32 %v1030_v56, %v547_v55  ;;  %vm554_vm12 = vweird.f32 %v1030_v56 }
 0x5a4   :  { %vm555_vm14 = vmor %vm553_vm13, %vm554_vm12 }
 0x5a5   :  { %v550_v58 = vsub.f32 1.0, %v549_v57 }
 0x5a7   :  { %v551_v59 = vmul.f32 %v1030_v56, %v550_v58 }
 0x5a9   :  { %v552_v61 = vadd.f32 %v1030_v56, %v551_v59 }
 0x5ab   :  { %v556_v0 = vsel %vm555_vm14, %v1030_v56, %v552_v61 }
 0x5ac   :  { %v561_v5 = vsel %vm558_vm15, %v560_v1, %v556_v0  ;;  %v317_v0 = vperm.slane %v1181_v4, 4 }
 0x5ad   :  { %v575_v27 = vsub.f32 1.0, %v561_v5 }
 0x603   :  { %v566_v3 = vpop.permute.xlu1 %565 }
 0x604   :  { %v568_v6 = vmul.f32 %v566_v3, %v561_v5 }
 0x606   :  { %570 = vrot.lane.b32.xlu2 %v568_v6, %s1147_s28 }
 0x60b   :  { %v583_v11 = vpop.permute.xlu1 %582 }
 0x60c   :  { %v585_v29 = vmul.f32 %v583_v11, %v561_v5 }
 0x60e   :  { %130 = vperm.xlu2 %1000, %v125_v7  }
 0x613   :  { %v251_v17 = vpop.permute.xlu1 %250 }
 0x614   :  { %v284_v20 = vmul.f32 %v1201_v49, %v251_v17 }
 0x616   :  { %315 = vperm.xlu2 %1000, %v310_v8  }
 0x660   :  { %v571_v9 = vpop.permute.xlu2 %570 }
 0x661   :  { %v573_v10 = vadd.f32 %v571_v9, %v542_v50 }
 0x663   :  { %1031 = vtanh.f32 %v573_v10 }
 0x668   :  { %v131_v12 = vpop.permute.xlu2 %130 }
 0x669   :  { %v1032_v13 = vpop.eup %1031  ;;  %v164_v14 = vmul.f32 %v1191_v33, %v131_v12 }
 0x66a   :  { %577 = vrot.lane.b32.xlu0 %v1032_v13, %s1148_s29 }
 0x66b   :  { %v173_v15 = vadd.f32 %v1193_v34, %v164_v14 }
 0x66d   :  { %v181_v16 = vmax.f32 %v173_v15, 0.0 }
 0x66f   :  { %v189_v18 = vsub.f32 0.0, %v181_v16 }
 0x670   :  { %v316_v19 = vpop.permute.xlu2 %315 }
 0x671   :  { %v200_v21 = vmul.f32 1.442695, %v189_v18  ;;  %v349_v22 = vmul.f32 %v1199_v46, %v316_v19 }
 0x673   :  { %1033 = vpow2.f32 %v200_v21  ;;  %v357_v23 = vadd.f32 %v349_v22, %v284_v20 }
 0x675   :  { %v366_v24 = vadd.f32 %v1204_v53, %v357_v23 }
 0x677   :  { %375 = vst.msk [vmem:[#allocation2 + $0x18] sm:$0xff] %vm371_vm3, %v366_v24 }
 0x679   :  { %v1034_v26 = vpop.eup %1033 }
 0x67a   :  { %214 = vst.msk [vmem:[#allocation3 + $0x18] sm:$0xff] %vm210_vm1, %v1034_v26 }
 0x67e   :  { %v612_v42 = vld [vmem:[#allocation2 + $0x18] sm:$0xff] }
 0x681   :  { %v588_v35 = vld [vmem:[#allocation3 + $0x18] sm:$0xff] }
 0x6dc   :  { %v578_v28 = vpop.permute.xlu0 %577 }
 0x6dd   :  { %v580_v30 = vmul.f32 %v578_v28, %v575_v27 }
 0x6df   :  { %v586_v31 = vadd.f32 %v585_v29, %v580_v30 }
 0x6e1   :  { %590 = vrot.lane.b32.xlu0 %v586_v31, %s1148_s29 }
 0x753   :  { %v591_v32 = vpop.permute.xlu0 %590 }
 0x754   :  { %v593_v36 = vmul.f32 %v591_v32, %v588_v35  ;;  %v259_v35 = vperm.slane %v1188_v25, 5 }
 0x756   :  { %v594_v37 = vpack.c.bf16 %v593_v36, %v593_v36 }
 0x758   :  { %979 = vmatmul.msk.bf16.vlgmr.msra.gmra.mxu3 %vm210_vm1, %v594_v37 }
 0x7db   :  { %v607_v38 = vpop.f32.mrf.mxu3 }
 0x7dc   :  { %v633_v39 = vadd.f32 %v1212_v60, %v607_v38  ;;  %v613_v43 = vadd.f32 %v612_v42, %v607_v38 }
 0x7de   :  { %635 = vrot.lane.b32.xlu0 %v633_v39, %s1147_s28  ;;  %v980_v44 = vmul.f32 -1.442695, %v613_v43 }
 0x7e0   :  { %1035 = vpow2.f32 %v980_v44 }
 0x7e3   :  { %v609_v40 = vpop.f32.mrf.mxu3 }
 0x7e6   :  { %652 = vrot.lane.b32.xlu0 %v593_v36, %s1146_s2  ;;  %v1036_v45 = vpop.eup %1035 }
 0x7e7   :  { %v617_v47 = vadd.f32 1.0, %v1036_v45 }
 0x7e9   :  { %1037 = vrcp.f32 %v617_v47  ;;  %v629_v55 = vand.u32 2147483648, %v617_v47  ;;  %vm623_vm2 = vweird.f32 %v617_v47  ;;  %v627_v56 = vand.u32 2147483647, %v617_v47 }
 0x7eb   :  { %v630_v58 = vor.u32 1.1754944e-38, %v629_v55  ;;  %vm628_vm5 = vcmp.eq.f32.partialorder %v627_v56, 8.507059e+37  ;;  %v139_v56 = vperm.slane %v1179_v2, 5 }
 0x7ee   :  { %257 = vperm.xlu0 %998, %v252_v41  }
 0x7ef   :  { %v1038_v48 = vpop.eup %1037 }
 0x7f0   :  { %v619_v50 = vmul.f32 %v1038_v48, %v617_v47  ;;  %vm624_vm0 = vweird.f32 %v1038_v48 }
 0x7f1   :  { %vm625_vm4 = vmor %vm623_vm2, %vm624_vm0 }
 0x7f2   :  { %v620_v51 = vsub.f32 1.0, %v619_v50 }
 0x7f4   :  { %v621_v52 = vmul.f32 %v1038_v48, %v620_v51 }
 0x7f6   :  { %v622_v54 = vadd.f32 %v1038_v48, %v621_v52 }
 0x7f8   :  { %v626_v57 = vsel %vm625_vm4, %v1038_v48, %v622_v54 }
 0x7f9   :  { %v631_v61 = vsel %vm628_vm5, %v630_v58, %v626_v57  ;;  %v324_v57 = vperm.slane %v1181_v4, 5 }
 0x7fa   :  { %v645_v20 = vsub.f32 1.0, %v631_v61 }
 0x850   :  { %v636_v59 = vpop.permute.xlu0 %635 }
 0x851   :  { %v638_v62 = vmul.f32 %v636_v59, %v631_v61 }
 0x853   :  { %640 = vrot.lane.b32.xlu1 %v638_v62, %s1147_s28 }
 0x858   :  { %v653_v5 = vpop.permute.xlu0 %652 }
 0x859   :  { %v655_v22 = vmul.f32 %v653_v5, %v631_v61 }
 0x85b   :  { %137 = vperm.xlu1 %999, %v132_v63  }
 0x860   :  { %v258_v11 = vpop.permute.xlu0 %257 }
 0x861   :  { %v285_v14 = vmul.f32 %v1201_v49, %v258_v11 }
 0x863   :  { %322 = vperm.xlu1 %999, %v317_v0  }
 0x8c5   :  { %v641_v1 = vpop.permute.xlu1 %640 }
 0x8c6   :  { %v643_v3 = vadd.f32 %v641_v1, %v612_v42 }
 0x8c8   :  { %1039 = vtanh.f32 %v643_v3 }
 0x8cd   :  { %v138_v6 = vpop.permute.xlu1 %137 }
 0x8ce   :  { %v1040_v7 = vpop.eup %1039  ;;  %v165_v8 = vmul.f32 %v1191_v33, %v138_v6 }
 0x8cf   :  { %647 = vrot.lane.b32.xlu2 %v1040_v7, %s1148_s29 }
 0x8d0   :  { %v174_v9 = vadd.f32 %v1193_v34, %v165_v8 }
 0x8d2   :  { %v182_v10 = vmax.f32 %v174_v9, 0.0 }
 0x8d4   :  { %v190_v12 = vsub.f32 0.0, %v182_v10 }
 0x8d5   :  { %v323_v13 = vpop.permute.xlu1 %322 }
 0x8d6   :  { %v202_v15 = vmul.f32 1.442695, %v190_v12  ;;  %v350_v16 = vmul.f32 %v1199_v46, %v323_v13 }
 0x8d8   :  { %1041 = vpow2.f32 %v202_v15  ;;  %v358_v17 = vadd.f32 %v350_v16, %v285_v14 }
 0x8da   :  { %v367_v18 = vadd.f32 %v1204_v53, %v358_v17 }
 0x8dc   :  { %376 = vst.msk [vmem:[#allocation2 + $0x20] sm:$0xff] %vm371_vm3, %v367_v18 }
 0x8de   :  { %v1042_v19 = vpop.eup %1041 }
 0x8df   :  { %215 = vst.msk [vmem:[#allocation3 + $0x20] sm:$0xff] %vm210_vm1, %v1042_v19 }
 0x8e3   :  { %v682_v36 = vld [vmem:[#allocation2 + $0x20] sm:$0xff] }
 0x8e6   :  { %v658_v27 = vld [vmem:[#allocation3 + $0x20] sm:$0xff] }
 0x929   :  { %v648_v21 = vpop.permute.xlu2 %647 }
 0x92a   :  { %v650_v23 = vmul.f32 %v648_v21, %v645_v20 }
 0x92c   :  { %v656_v24 = vadd.f32 %v655_v22, %v650_v23 }
 0x92e   :  { %660 = vrot.lane.b32.xlu2 %v656_v24, %s1148_s29 }
 0x988   :  { %v661_v26 = vpop.permute.xlu2 %660 }
 0x989   :  { %v663_v28 = vmul.f32 %v661_v26, %v658_v27  ;;  %v266_v27 = vperm.slane %v1188_v25, 6 }
 0x98b   :  { %v664_v29 = vpack.c.bf16 %v663_v28, %v663_v28 }
 0x98d   :  { %981 = vmatmul.msk.bf16.vlgmr.msrb.gmra.mxu0 %vm210_vm1, %v664_v29 }
 0xa0a   :  { %v677_v30 = vpop.f32.mrf.mxu0 }
 0xa0b   :  { %v703_v31 = vadd.f32 %v1212_v60, %v677_v30  ;;  %v683_v37 = vadd.f32 %v682_v36, %v677_v30 }
 0xa0d   :  { %705 = vrot.lane.b32.xlu2 %v703_v31, %s1147_s28  ;;  %v982_v38 = vmul.f32 -1.442695, %v683_v37 }
 0xa0f   :  { %1043 = vpow2.f32 %v982_v38 }
 0xa12   :  { %v679_v32 = vpop.f32.mrf.mxu0 }
 0xa15   :  { %722 = vrot.lane.b32.xlu2 %v663_v28, %s1146_s2  ;;  %v1044_v39 = vpop.eup %1043 }
 0xa16   :  { %v687_v40 = vadd.f32 1.0, %v1044_v39 }
 0xa18   :  { %1045 = vrcp.f32 %v687_v40  ;;  %v699_v47 = vand.u32 2147483648, %v687_v40  ;;  %vm693_vm7 = vweird.f32 %v687_v40  ;;  %v697_v48 = vand.u32 2147483647, %v687_v40 }
 0xa1a   :  { %v700_v51 = vor.u32 1.1754944e-38, %v699_v47  ;;  %vm698_vm9 = vcmp.eq.f32.partialorder %v697_v48, 8.507059e+37  ;;  %v146_v48 = vperm.slane %v1179_v2, 6 }
 0xa1d   :  { %264 = vperm.xlu2 %1000, %v259_v35  }
 0xa1e   :  { %v1046_v41 = vpop.eup %1045 }
 0xa1f   :  { %v689_v42 = vmul.f32 %v1046_v41, %v687_v40  ;;  %vm694_vm6 = vweird.f32 %v1046_v41 }
 0xa20   :  { %vm695_vm8 = vmor %vm693_vm7, %vm694_vm6  ;;  %vm963_vm7 = vcmask 31744  }
 0xa21   :  { %v690_v43 = vsub.f32 1.0, %v689_v42 }
 0xa23   :  { %v691_v44 = vmul.f32 %v1046_v41, %v690_v43 }
 0xa25   :  { %v692_v45 = vadd.f32 %v1046_v41, %v691_v44 }
 0xa27   :  { %v696_v50 = vsel %vm695_vm8, %v1046_v41, %v692_v45 }
 0xa28   :  { %v701_v54 = vsel %vm698_vm9, %v700_v51, %v696_v50  ;;  %v331_v50 = vperm.slane %v1181_v4, 6 }
 0xa29   :  { %v715_v14 = vsub.f32 1.0, %v701_v54 }
 0xa67   :  { %v706_v52 = vpop.permute.xlu2 %705 }
 0xa68   :  { %v708_v55 = vmul.f32 %v706_v52, %v701_v54 }
 0xa6a   :  { %710 = vrot.lane.b32.xlu0 %v708_v55, %s1147_s28 }
 0xa6f   :  { %v723_v61 = vpop.permute.xlu2 %722 }
 0xa70   :  { %v725_v16 = vmul.f32 %v723_v61, %v701_v54 }
 0xa72   :  { %144 = vperm.xlu0 %998, %v139_v56  }
 0xa77   :  { %v265_v5 = vpop.permute.xlu2 %264 }
 0xa78   :  { %v286_v8 = vmul.f32 %v1201_v49, %v265_v5 }
 0xa7a   :  { %329 = vperm.xlu0 %998, %v324_v57  }
 0xadc   :  { %v711_v58 = vpop.permute.xlu0 %710 }
 0xadd   :  { %v713_v59 = vadd.f32 %v711_v58, %v682_v36 }
 0xadf   :  { %1047 = vtanh.f32 %v713_v59 }
 0xae4   :  { %v145_v62 = vpop.permute.xlu0 %144 }
 0xae5   :  { %v1048_v63 = vpop.eup %1047  ;;  %v166_v0 = vmul.f32 %v1191_v33, %v145_v62 }
 0xae6   :  { %717 = vrot.lane.b32.xlu1 %v1048_v63, %s1148_s29 }
 0xae7   :  { %v175_v1 = vadd.f32 %v1193_v34, %v166_v0 }
 0xae9   :  { %v183_v3 = vmax.f32 %v175_v1, 0.0 }
 0xaeb   :  { %v191_v6 = vsub.f32 0.0, %v183_v3 }
 0xaec   :  { %v330_v7 = vpop.permute.xlu0 %329 }
 0xaed   :  { %v204_v9 = vmul.f32 1.442695, %v191_v6  ;;  %v351_v10 = vmul.f32 %v1199_v46, %v330_v7 }
 0xaef   :  { %1049 = vpow2.f32 %v204_v9  ;;  %v359_v11 = vadd.f32 %v351_v10, %v286_v8 }
 0xaf1   :  { %v368_v12 = vadd.f32 %v1204_v53, %v359_v11 }
 0xaf3   :  { %377 = vst.msk [vmem:[#allocation2 + $0x28] sm:$0xff] %vm371_vm3, %v368_v12 }
 0xaf5   :  { %v1050_v13 = vpop.eup %1049 }
 0xaf6   :  { %216 = vst.msk [vmem:[#allocation3 + $0x28] sm:$0xff] %vm210_vm1, %v1050_v13 }
 0xafa   :  { %v752_v28 = vld [vmem:[#allocation2 + $0x28] sm:$0xff] }
 0xafd   :  { %v728_v20 = vld [vmem:[#allocation3 + $0x28] sm:$0xff] }
 0xb58   :  { %v718_v15 = vpop.permute.xlu1 %717 }
 0xb59   :  { %v720_v17 = vmul.f32 %v718_v15, %v715_v14 }
 0xb5b   :  { %v726_v18 = vadd.f32 %v725_v16, %v720_v17 }
 0xb5d   :  { %730 = vrot.lane.b32.xlu1 %v726_v18, %s1148_s29  ;;  %v273_v18 = vperm.slane %v1188_v25, 7 }
 0xbcf   :  { %v731_v19 = vpop.permute.xlu1 %730 }
 0xbd0   :  { %v733_v21 = vmul.f32 %v731_v19, %v728_v20 }
 0xbd2   :  { %v734_v22 = vpack.c.bf16 %v733_v21, %v733_v21 }
 0xbd4   :  { %983 = vmatmul.msk.bf16.vlgmr.msrb.gmra.mxu1 %vm210_vm1, %v734_v22 }
 0xc51   :  { %v747_v23 = vpop.f32.mrf.mxu1 }
 0xc52   :  { %v773_v24 = vadd.f32 %v1212_v60, %v747_v23  ;;  %v753_v29 = vadd.f32 %v752_v28, %v747_v23 }
 0xc54   :  { %775 = vrot.lane.b32.xlu1 %v773_v24, %s1147_s28  ;;  %v984_v30 = vmul.f32 -1.442695, %v753_v29 }
 0xc56   :  { %1051 = vpow2.f32 %v984_v30 }
 0xc59   :  { %v749_v26 = vpop.f32.mrf.mxu1 }
 0xc5c   :  { %792 = vrot.lane.b32.xlu1 %v733_v21, %s1146_s2  ;;  %v1052_v31 = vpop.eup %1051 }
 0xc5d   :  { %v757_v32 = vadd.f32 1.0, %v1052_v31 }
 0xc5f   :  { %1053 = vrcp.f32 %v757_v32  ;;  %v769_v40 = vand.u32 2147483648, %v757_v32  ;;  %vm763_vm11 = vweird.f32 %v757_v32  ;;  %v767_v41 = vand.u32 2147483647, %v757_v32 }
 0xc61   :  { %v770_v43 = vor.u32 1.1754944e-38, %v769_v40  ;;  %vm768_vm13 = vcmp.eq.f32.partialorder %v767_v41, 8.507059e+37  ;;  %v1074_v40 = vld [vmem:[#allocation7 + $0x10] sm:$0xff] }
 0xc62   :  { %v338_v41 = vperm.slane %v1074_v40, 7 }
 0xc64   :  { %271 = vperm.xlu1 %999, %v266_v27  }
 0xc65   :  { %v1054_v35 = vpop.eup %1053 }
 0xc66   :  { %v759_v36 = vmul.f32 %v1054_v35, %v757_v32  ;;  %vm764_vm10 = vweird.f32 %v1054_v35 }
 0xc67   :  { %vm765_vm12 = vmor %vm763_vm11, %vm764_vm10 }
 0xc68   :  { %v760_v37 = vsub.f32 1.0, %v759_v36 }
 0xc6a   :  { %v761_v38 = vmul.f32 %v1054_v35, %v760_v37 }
 0xc6c   :  { %v762_v39 = vadd.f32 %v1054_v35, %v761_v38  ;;  %v1073_v38 = vld [vmem:[#allocation7 + $0x18] sm:$0xff] }
 0xc6e   :  { %v766_v42 = vsel %vm765_vm12, %v1054_v35, %v762_v39  ;;  %v153_v39 = vperm.slane %v1073_v38, 7  ;;  %v1006_v38 = vld [vmem:[#allocation8 + $0x50] ss:$0 sm:$0xff] }
 0xc6f   :  { %v771_v45 = vsel %vm768_vm13, %v770_v43, %v766_v42 }
 0xc70   :  { %v785_v6 = vsub.f32 1.0, %v771_v45 }
 0xcc6   :  { %v776_v44 = vpop.permute.xlu1 %775 }
 0xcc7   :  { %v778_v47 = vmul.f32 %v776_v44, %v771_v45 }
 0xcc9   :  { %780 = vrot.lane.b32.xlu2 %v778_v47, %s1147_s28 }
 0xcce   :  { %v793_v54 = vpop.permute.xlu1 %792 }
 0xccf   :  { %v795_v8 = vmul.f32 %v793_v54, %v771_v45 }
 0xcd1   :  { %151 = vperm.xlu2 %1000, %v146_v48  }
 0xcd6   :  { %v272_v61 = vpop.permute.xlu1 %271 }
 0xcd7   :  { %v287_v63 = vmul.f32 %v1201_v49, %v272_v61 }
 0xcd9   :  { %336 = vperm.xlu2 %1000, %v331_v50  }
 0xd23   :  { %v781_v51 = vpop.permute.xlu2 %780 }
 0xd24   :  { %v783_v52 = vadd.f32 %v781_v51, %v752_v28 }
 0xd26   :  { %1055 = vtanh.f32 %v783_v52 }
 0xd2b   :  { %v152_v55 = vpop.permute.xlu2 %151 }
 0xd2c   :  { %v1056_v56 = vpop.eup %1055  ;;  %v167_v57 = vmul.f32 %v1191_v33, %v152_v55 }
 0xd2d   :  { %787 = vrot.lane.b32.xlu0 %v1056_v56, %s1148_s29 }
 0xd2e   :  { %v176_v58 = vadd.f32 %v1193_v34, %v167_v57 }
 0xd30   :  { %v184_v59 = vmax.f32 %v176_v58, 0.0 }
 0xd32   :  { %v192_v62 = vsub.f32 0.0, %v184_v59 }
 0xd33   :  { %v337_v2 = vpop.permute.xlu2 %336 }
 0xd34   :  { %v206_v4 = vmul.f32 1.442695, %v192_v62  ;;  %v352_v0 = vmul.f32 %v1199_v46, %v337_v2 }
 0xd36   :  { %1057 = vpow2.f32 %v206_v4  ;;  %v360_v1 = vadd.f32 %v352_v0, %v287_v63 }
 0xd38   :  { %v369_v3 = vadd.f32 %v1204_v53, %v360_v1 }
 0xd3a   :  { %378 = vst.msk [vmem:[#allocation2 + $0x30] sm:$0xff] %vm371_vm3, %v369_v3 }
 0xd3c   :  { %v1058_v5 = vpop.eup %1057 }
 0xd3d   :  { %217 = vst.msk [vmem:[#allocation3 + $0x30] sm:$0xff] %vm210_vm1, %v1058_v5 }
 0xd41   :  { %v822_v19 = vld [vmem:[#allocation2 + $0x30] sm:$0xff] }
 0xd44   :  { %v798_v12 = vld [vmem:[#allocation3 + $0x30] sm:$0xff] }
 0xd9f   :  { %v788_v7 = vpop.permute.xlu0 %787 }
 0xda0   :  { %v790_v9 = vmul.f32 %v788_v7, %v785_v6 }
 0xda2   :  { %v796_v10 = vadd.f32 %v795_v8, %v790_v9 }
 0xda4   :  { %800 = vrot.lane.b32.xlu0 %v796_v10, %s1148_s29 }
 0xe16   :  { %v801_v11 = vpop.permute.xlu0 %800 }
 0xe17   :  { %v803_v13 = vmul.f32 %v801_v11, %v798_v12 }
 0xe19   :  { %v804_v14 = vpack.c.bf16 %v803_v13, %v803_v13 }
 0xe1b   :  { %985 = vmatmul.msk.bf16.vlgmr.msrb.gmra.mxu2 %vm210_vm1, %v804_v14 }
 0xe9e   :  { %v817_v15 = vpop.f32.mrf.mxu2 }
 0xe9f   :  { %v843_v16 = vadd.f32 %v1212_v60, %v817_v15  ;;  %v823_v20 = vadd.f32 %v822_v19, %v817_v15 }
 0xea1   :  { %845 = vrot.lane.b32.xlu0 %v843_v16, %s1147_s28  ;;  %v986_v21 = vmul.f32 -1.442695, %v823_v20 }
 0xea3   :  { %1059 = vpow2.f32 %v986_v21 }
 0xea6   :  { %v819_v17 = vpop.f32.mrf.mxu2 }
 0xea9   :  { %862 = vrot.lane.b32.xlu0 %v803_v13, %s1146_s2  ;;  %v1060_v22 = vpop.eup %1059 }
 0xeaa   :  { %v827_v23 = vadd.f32 1.0, %v1060_v22 }
 0xeac   :  { %1061 = vrcp.f32 %v827_v23  ;;  %v839_v30 = vand.u32 2147483648, %v827_v23  ;;  %vm833_vm15 = vweird.f32 %v827_v23  ;;  %v837_v31 = vand.u32 2147483647, %v827_v23 }
 0xeae   :  { %v840_v25 = vor.u32 1.1754944e-38, %v839_v30  ;;  %vm838_vm2 = vcmp.eq.f32.partialorder %v837_v31, 8.507059e+37 }
 0xeb1   :  { %278 = vperm.xlu0 %998, %v273_v18  }
 0xeb2   :  { %v1062_v24 = vpop.eup %1061 }
 0xeb3   :  { %v829_v26 = vmul.f32 %v1062_v24, %v827_v23  ;;  %vm834_vm14 = vweird.f32 %v1062_v24 }
 0xeb4   :  { %vm835_vm0 = vmor %vm833_vm15, %vm834_vm14 }
 0xeb5   :  { %v830_v27 = vsub.f32 1.0, %v829_v26  ;;  %v86_v26 = vld [vmem:[#allocation8 + $0x48] sm:$0xff] }
 0xeb6   :  { %955 = vmatpush.msra.mxu0 %v86_v26 }
 0xeb7   :  { %v831_v28 = vmul.f32 %v1062_v24, %v830_v27  ;;  %v85_v27 = vld [vmem:[#allocation8 + $0x40] sm:$0xff] }
 0xeb8   :  { %956 = vmatpush.msra.mxu0 %v85_v27 }
 0xeb9   :  { %v832_v29 = vadd.f32 %v1062_v24, %v831_v28  ;;  %v84_v28 = vld [vmem:[#allocation8 + $0x38] sm:$0xff] }
 0xeba   :  { %957 = vmatpush.msra.mxu0 %v84_v28 }
 0xebb   :  { %v836_v32 = vsel %vm835_vm0, %v1062_v24, %v832_v29  ;;  %v83_v29 = vld [vmem:[#allocation8 + $0x30] sm:$0xff] }
 0xebc   :  { %v841_v36 = vsel %vm838_vm2, %v840_v25, %v836_v32  ;;  %958 = vmatpush.msra.mxu0 %v83_v29 }
 0xebd   :  { %v855_v62 = vsub.f32 1.0, %v841_v36 }
 0xf13   :  { %v846_v35 = vpop.permute.xlu0 %845 }
 0xf14   :  { %v848_v37 = vmul.f32 %v846_v35, %v841_v36 }
 0xf16   :  { %850 = vrot.lane.b32.xlu1 %v848_v37, %s1147_s28 }
 0xf1b   :  { %v863_v44 = vpop.permute.xlu0 %862 }
 0xf1c   :  { %v865_v2 = vmul.f32 %v863_v44, %v841_v36 }
 0xf1e   :  { %158 = vperm.xlu1 %999, %v153_v39  }
 0xf23   :  { %v279_v52 = vpop.permute.xlu0 %278 }
 0xf24   :  { %v288_v56 = vmul.f32 %v1201_v49, %v279_v52 }
 0xf26   :  { %343 = vperm.xlu1 %999, %v338_v41  }
 0xf88   :  { %v851_v42 = vpop.permute.xlu1 %850 }
 0xf89   :  { %v853_v43 = vadd.f32 %v851_v42, %v822_v19 }
 0xf8b   :  { %1063 = vtanh.f32 %v853_v43 }
 0xf90   :  { %v159_v45 = vpop.permute.xlu1 %158 }
 0xf91   :  { %v1064_v47 = vpop.eup %1063  ;;  %v168_v48 = vmul.f32 %v1191_v33, %v159_v45 }
 0xf92   :  { %857 = vrot.lane.b32.xlu2 %v1064_v47, %s1148_s29 }
 0xf93   :  { %v177_v50 = vadd.f32 %v1193_v34, %v168_v48 }
 0xf95   :  { %v185_v51 = vmax.f32 %v177_v50, 0.0 }
 0xf97   :  { %v193_v54 = vsub.f32 0.0, %v185_v51 }
 0xf98   :  { %v344_v55 = vpop.permute.xlu1 %343 }
 0xf99   :  { %v208_v57 = vmul.f32 1.442695, %v193_v54  ;;  %v353_v58 = vmul.f32 %v1199_v46, %v344_v55 }
 0xf9b   :  { %1065 = vpow2.f32 %v208_v57  ;;  %v361_v59 = vadd.f32 %v353_v58, %v288_v56 }
 0xf9d   :  { %v370_v61 = vadd.f32 %v1204_v53, %v361_v59 }
 0xf9f   :  { %379 = vst.msk [vmem:[#allocation2 + $0x38] sm:$0xff] %vm371_vm3, %v370_v61 }
 0xfa1   :  { %v1066_v33 = vpop.eup %1065 }
 0xfa2   :  { %218 = vst.msk [vmem:[#allocation3 + $0x38] sm:$0xff] %vm210_vm1, %v1066_v33 }
 0xfa6   :  { %v892_v6 = vld [vmem:[#allocation2 + $0x38] sm:$0xff] }
 0xfa9   :  { %v868_v0 = vld [vmem:[#allocation3 + $0x38] sm:$0xff] }
 0xfec   :  { %v858_v34 = vpop.permute.xlu2 %857 }
 0xfed   :  { %v860_v63 = vmul.f32 %v858_v34, %v855_v62 }
 0xfef   :  { %v866_v4 = vadd.f32 %v865_v2, %v860_v63 }
 0xff1   :  { %870 = vrot.lane.b32.xlu2 %v866_v4, %s1148_s29 }
0x104b   :  { %v871_v49 = vpop.permute.xlu2 %870 }
0x104c   :  { %v873_v1 = vmul.f32 %v871_v49, %v868_v0 }
0x104e   :  { %v874_v46 = vpack.c.bf16 %v873_v1, %v873_v1 }
0x1050   :  { %987 = vmatmul.msk.bf16.vlgmr.msrb.gmra.mxu3 %vm210_vm1, %v874_v46 }
0x10d3   :  { %v887_v3 = vpop.f32.mrf.mxu3 }
0x10d4   :  { %v913_v53 = vadd.f32 %v1212_v60, %v887_v3  ;;  %v893_v7 = vadd.f32 %v892_v6, %v887_v3 }
0x10d6   :  { %915 = vrot.lane.b32.xlu2 %v913_v53, %s1147_s28  ;;  %v988_v8 = vmul.f32 -1.442695, %v893_v7 }
0x10d8   :  { %1067 = vpow2.f32 %v988_v8 }
0x10db   :  { %v889_v5 = vpop.f32.mrf.mxu3 }
0x10de   :  { %932 = vrot.lane.b32.xlu2 %v873_v1, %s1146_s2  ;;  %v1068_v9 = vpop.eup %1067 }
0x10df   :  { %v897_v10 = vadd.f32 1.0, %v1068_v9 }
0x10e1   :  { %1069 = vrcp.f32 %v897_v10  ;;  %v909_v16 = vand.u32 2147483648, %v897_v10  ;;  %vm903_vm4 = vweird.f32 %v897_v10  ;;  %v907_v60 = vand.u32 2147483647, %v897_v10 }
0x10e3   :  { %v910_v18 = vor.u32 1.1754944e-38, %v909_v16  ;;  %vm908_vm6 = vcmp.eq.f32.partialorder %v907_v60, 8.507059e+37 }
0x10e7   :  { %v1070_v11 = vpop.eup %1069 }
0x10e8   :  { %v899_v12 = vmul.f32 %v1070_v11, %v897_v10  ;;  %vm904_vm3 = vweird.f32 %v1070_v11 }
0x10e9   :  { %vm905_vm5 = vmor %vm903_vm4, %vm904_vm3 }
0x10ea   :  { %v900_v13 = vsub.f32 1.0, %v899_v12 }
0x10ec   :  { %v901_v14 = vmul.f32 %v1070_v11, %v900_v13 }
0x10ee   :  { %v902_v15 = vadd.f32 %v1070_v11, %v901_v14 }
0x10f0   :  { %v906_v17 = vsel %vm905_vm5, %v1070_v11, %v902_v15 }
0x10f1   :  { %v911_v20 = vsel %vm908_vm6, %v910_v18, %v906_v17 }
0x10f2   :  { %v925_v31 = vsub.f32 1.0, %v911_v20 }
0x1130   :  { %v916_v19 = vpop.permute.xlu2 %915 }
0x1131   :  { %v918_v21 = vmul.f32 %v916_v19, %v911_v20 }
0x1133   :  { %920 = vrot.lane.b32.xlu0 %v918_v21, %s1147_s28 }
0x1138   :  { %v933_v30 = vpop.permute.xlu2 %932 }
0x1139   :  { %v935_v25 = vmul.f32 %v933_v30, %v911_v20 }
0x11a5   :  { %v921_v22 = vpop.permute.xlu0 %920 }
0x11a6   :  { %v923_v23 = vadd.f32 %v921_v22, %v892_v6 }
0x11a8   :  { %1071 = vtanh.f32 %v923_v23 }
0x11ae   :  { %v1072_v24 = vpop.eup %1071 }
0x11af   :  { %927 = vrot.lane.b32.xlu1 %v1072_v24, %s1148_s29 }
0x1221   :  { %v928_v32 = vpop.permute.xlu1 %927 }
0x1222   :  { %v930_v35 = vmul.f32 %v928_v32, %v925_v31 }
0x1224   :  { %v936_v36 = vadd.f32 %v935_v25, %v930_v35 }
0x1226   :  { %939 = vrot.lane.b32.xlu0 %v936_v36, %s1148_s29 }
0x1298   :  { %v940_v37 = vpop.permute.xlu0 %939 }
0x1299   :  { %989 = vmatmul.msk.f32.vlgmr.msra.gmra.mxu0 %vm210_vm1, %v940_v37 }
0x1316   :  { %v960_v39 = vpop.f32.mrf.mxu0 }
0x1317   :  { %v961_v40 = vadd.f32 %v1006_v38, %v960_v39 }
0x1319   :  { %964 = vst.msk [vmem:[%s1342_s3] sm:$0xff] %vm963_vm7, %v961_v40 }
0x131a   :  { %969 = vsyncpa [#allocation5], 1 }
0x131b   :  { %970 = vsyncpa [#allocation9], 1 }
0x131c   :  { %971 = vsyncpa [#allocation6], 1 }

</bundles_post_ra>
